<compile_context>
chip_gen: v7x
topology: tpu7x:2x2x1
jax: 0.10.0
libtpu: 0.0.40
codegen_flags: <defaults>
</compile_context>

<pallas_src>
import jax
import jax.numpy as jnp
from jax import lax
from jax.experimental import pallas as pl
from jax.experimental.pallas import tpu as pltpu


# ----------------------------- Pallas kernel -------------------------------

_VMEM_SPEC = pl.BlockSpec(memory_space=pltpu.MemorySpace.VMEM)


def make_fused_lstm_fc_kernel(num_layers, T, B, H):
    """Builds a kernel running `num_layers` LSTM layers + the FC head.

    Kernel argument order:
      x_ref (T*B, D_in),
      [wih_l (D_l, 4H), whh_l (H, 4H), b_l (1, 4H)] * num_layers,
      wfc (H, P_pad), bfc (1, P_pad),
      out_ref (B, P_pad),
      hs_ref (T*B, H) VMEM scratch (inter-layer hidden sequence)

    B is the (sublane-padded) batch; g-gate columns of the weights/bias are
    pre-scaled by 2 so g = 2*sigmoid(.) - 1.
    """

    def kernel(*refs):
        x_ref = refs[0]
        layer_refs = refs[1:1 + 3 * num_layers]
        wfc_ref = refs[1 + 3 * num_layers]
        bfc_ref = refs[2 + 3 * num_layers]
        out_ref = refs[3 + 3 * num_layers]
        hs_ref = refs[4 + 3 * num_layers]          # VMEM scratch (T*B, H)

        h = None
        for l in range(num_layers):
            # Weight/bias loads hoisted out of the recurrence.
            wih = layer_refs[3 * l][...]            # (D_l, 4H), g cols pre-scaled
            whh = layer_refs[3 * l + 1][...]        # (H, 4H),  g cols pre-scaled
            b = layer_refs[3 * l + 2][...]          # (1, 4H),  g cols pre-scaled

            # Layer input: raw sequence for layer 0, scratch buffer afterwards.
            seq = x_ref[...] if l == 0 else hs_ref[...]

            # Hoisted whole-sequence input projection (one matmul).
            xproj = jnp.dot(seq, wih,
                            preferred_element_type=jnp.float32) + b   # (T*B, 4H)

            h = jnp.zeros((B, H), jnp.float32)
            c = jnp.zeros((B, H), jnp.float32)
            last_layer = (l == num_layers - 1)

            # Fully unrolled recurrence (T small & static). B is a full
            # sublane tile, so every slice below is vreg-aligned.
            for t in range(T):
                gates = (xproj[t * B:(t + 1) * B, :]
                         + jnp.dot(h, whh, preferred_element_type=jnp.float32))
                # Single sigmoid EUP push over the whole (B, 4H) gates vreg;
                # g gate recovered via tanh(x) = 2*sigmoid(2x) - 1 (columns
                # were pre-scaled by 2 at prep time).
                sig = jax.nn.sigmoid(gates)
                i_g = sig[:, 0 * H:1 * H]
                f_g = sig[:, 1 * H:2 * H]
                g_g = 2.0 * sig[:, 2 * H:3 * H] - 1.0
                o_g = sig[:, 3 * H:4 * H]
                c = f_g * c + i_g * g_g
                h = o_g * jnp.tanh(c)
                if not last_layer:
                    # Per-step scratch store (no end-of-layer concatenate).
                    hs_ref[t * B:(t + 1) * B, :] = h

        # Final Linear on h at t = T-1 only (lane-dense padded output store).
        out_ref[...] = (jnp.dot(h, wfc_ref[...],
                                preferred_element_type=jnp.float32)
                        + bfc_ref[...])

    return kernel


# ------------------------------- wrapper ----------------------------------

def prepare_pallas_params(params, hidden_size):
    """One-time prep: transpose weights, fuse biases, pre-scale g-gate columns
    by 2 (so g = 2*sigmoid - 1 in-kernel), pad FC output to 128 lanes."""
    H = hidden_size
    g_scale = jnp.ones((4 * H,), jnp.float32).at[2 * H:3 * H].set(2.0)

    prepared = {"layers": []}
    for lp in params["lstm"]:
        wih_t = jnp.asarray(lp["w_ih"].T, jnp.float32) * g_scale       # (D_in, 4H)
        whh_t = jnp.asarray(lp["w_hh"].T, jnp.float32) * g_scale       # (H, 4H)
        b = ((lp["b_ih"] + lp["b_hh"]).astype(jnp.float32) * g_scale).reshape(1, 4 * H)
        prepared["layers"].append({"wih_t": wih_t, "whh_t": whh_t, "b": b})

    out_dim = params["fc"]["w"].shape[0]
    pad = (-out_dim) % 128
    w_fc_t = jnp.asarray(params["fc"]["w"].T, jnp.float32)             # (H, out_dim)
    b_fc = params["fc"]["b"].reshape(1, -1).astype(jnp.float32)
    if pad:
        w_fc_t = jnp.pad(w_fc_t, ((0, 0), (0, pad)))
        b_fc = jnp.pad(b_fc, ((0, 0), (0, pad)))
    prepared["fc_w"] = w_fc_t
    prepared["fc_b"] = b_fc
    prepared["out_dim"] = out_dim
    return prepared


def lstm_model_forward(x, prep, hidden_size, prediction_length):
    """Pallas implementation of LSTMModel.forward.

    x: (B, T, input_size) float32. Returns (B, prediction_length, output_size).
    """
    B, T, D_in = x.shape
    H = hidden_size
    num_layers = len(prep["layers"])

    # Pad batch to a full sublane tile so all recurrent slices/stores are
    # vreg-aligned (padded rows are computed and discarded).
    B_pad = ((B + 7) // 8) * 8
    if B_pad != B:
        x = jnp.pad(x, ((0, B_pad - B), (0, 0), (0, 0)))

    # Time-major, flattened to 2-D so the whole-sequence projection is one matmul.
    x_tm = jnp.transpose(x, (1, 0, 2)).reshape(T * B_pad, D_in).astype(jnp.float32)

    args = [x_tm]
    in_specs = [_VMEM_SPEC]
    for lp in prep["layers"]:
        args += [lp["wih_t"], lp["whh_t"], lp["b"]]
        in_specs += [_VMEM_SPEC, _VMEM_SPEC, _VMEM_SPEC]
    args += [prep["fc_w"], prep["fc_b"]]
    in_specs += [_VMEM_SPEC, _VMEM_SPEC]

    fc_cols = prep["fc_w"].shape[1]                      # multiple of 128
    kernel = make_fused_lstm_fc_kernel(num_layers, T, B_pad, H)

    y_pad = pl.pallas_call(
        kernel,
        out_shape=jax.ShapeDtypeStruct((B_pad, fc_cols), jnp.float32),
        in_specs=in_specs,
        out_specs=_VMEM_SPEC,
        scratch_shapes=[pltpu.VMEM((T * B_pad, H), jnp.float32)],
    )(*args)

    out_dim = prep["out_dim"]
    return y_pad[:B, :out_dim].reshape(B, prediction_length, -1)


# ------------------------- deterministic params ----------------------------

def init_params(key, input_size, hidden_size, output_size, num_layers, prediction_length):
    H = hidden_size
    bound = 1.0 / jnp.sqrt(jnp.float32(H))
    params = {"lstm": [], "fc": {}}
    for layer in range(num_layers):
        d_in = input_size if layer == 0 else H
        key, k1, k2, k3, k4 = jax.random.split(key, 5)
        params["lstm"].append({
            "w_ih": jax.random.uniform(k1, (4 * H, d_in), jnp.float32, -bound, bound),
            "w_hh": jax.random.uniform(k2, (4 * H, H), jnp.float32, -bound, bound),
            "b_ih": jax.random.uniform(k3, (4 * H,), jnp.float32, -bound, bound),
            "b_hh": jax.random.uniform(k4, (4 * H,), jnp.float32, -bound, bound),
        })
    key, k1, k2 = jax.random.split(key, 3)
    out_dim = output_size * prediction_length
    params["fc"] = {
        "w": jax.random.uniform(k1, (out_dim, H), jnp.float32, -bound, bound),
        "b": jax.random.uniform(k2, (out_dim,), jnp.float32, -bound, bound),
    }
    return params


# --------------------------- pure-JAX reference -----------------------------

def reference_forward(x, params, hidden_size, prediction_length):
    B, T, _ = x.shape
    H = hidden_size
    layer_in = x
    for lp in params["lstm"]:
        def step(carry, x_t):
            h, c = carry
            gates = x_t @ lp["w_ih"].T + h @ lp["w_hh"].T + lp["b_ih"] + lp["b_hh"]
            i_g = jax.nn.sigmoid(gates[:, 0 * H:1 * H])
            f_g = jax.nn.sigmoid(gates[:, 1 * H:2 * H])
            g_g = jnp.tanh(gates[:, 2 * H:3 * H])
            o_g = jax.nn.sigmoid(gates[:, 3 * H:4 * H])
            c_new = f_g * c + i_g * g_g
            h_new = o_g * jnp.tanh(c_new)
            return (h_new, c_new), h_new
        h0 = jnp.zeros((B, H), jnp.float32)
        c0 = jnp.zeros((B, H), jnp.float32)
        _, hs = lax.scan(step, (h0, c0), jnp.transpose(layer_in, (1, 0, 2)))
        layer_in = jnp.transpose(hs, (1, 0, 2))
    h_last = layer_in[:, -1, :]
    y = h_last @ params["fc"]["w"].T + params["fc"]["b"]
    return y.reshape(B, prediction_length, -1)


# --------------------------------- main -------------------------------------

if __name__ == "__main__":
    # Model hyperparameters (small, consistent with the PyTorch module).
    input_size = 4
    hidden_size = 32
    output_size = 2
    num_layers = 2
    prediction_length = 24

    batch = 2
    seq = 8

    key = jax.random.PRNGKey(0)
    key, xk = jax.random.split(key)
    x = jax.random.normal(xk, (batch, seq, input_size), jnp.float32)

    params = init_params(key, input_size, hidden_size, output_size,
                         num_layers, prediction_length)
    prep = prepare_pallas_params(params, hidden_size)    # one-time weight prep

    out = lstm_model_forward(x, prep, hidden_size, prediction_length)
    out = jax.block_until_ready(out)

    ref = reference_forward(x, params, hidden_size, prediction_length)
    assert out.shape == (batch, prediction_length, output_size), out.shape
    # Tolerance 1e-4: the in-kernel g gate uses tanh(x) = 2*sigmoid(2x) - 1,
    # which is mathematically identical but can differ by a few ulps per step.
    assert jnp.allclose(out, ref, atol=1e-4, rtol=1e-4), \
        f"max abs err {jnp.max(jnp.abs(out - ref))}"

    print("KERNEL_OK")
</pallas_src>

<mosaic_0001>
module attributes {stable_mosaic.version = 11 : i64} {
  func.func @kernel(%arg0: memref<64x4xf32, #tpu.memory_space<vmem>>, %arg1: memref<4x128xf32, #tpu.memory_space<vmem>>, %arg2: memref<32x128xf32, #tpu.memory_space<vmem>>, %arg3: memref<1x128xf32, #tpu.memory_space<vmem>>, %arg4: memref<32x128xf32, #tpu.memory_space<vmem>>, %arg5: memref<32x128xf32, #tpu.memory_space<vmem>>, %arg6: memref<1x128xf32, #tpu.memory_space<vmem>>, %arg7: memref<32x128xf32, #tpu.memory_space<vmem>>, %arg8: memref<1x128xf32, #tpu.memory_space<vmem>>, %arg9: memref<8x128xf32, #tpu.memory_space<vmem>>, %arg10: memref<64x32xf32, #tpu.memory_space<vmem>>) attributes {dimension_semantics = [], scalar_prefetch = 0 : i64, scratch_operands = 1 : i64, tpu.core_type = #tpu.core_type<tc>} {
    %c0 = arith.constant 0 : index
    %c0_0 = arith.constant 0 : index
    %0 = vector.load %arg1[%c0, %c0_0] : memref<4x128xf32, #tpu.memory_space<vmem>>, vector<4x128xf32>
    %c0_1 = arith.constant 0 : index
    %c0_2 = arith.constant 0 : index
    %1 = vector.load %arg2[%c0_1, %c0_2] : memref<32x128xf32, #tpu.memory_space<vmem>>, vector<32x128xf32>
    %c0_3 = arith.constant 0 : index
    %c0_4 = arith.constant 0 : index
    %2 = vector.load %arg3[%c0_3, %c0_4] : memref<1x128xf32, #tpu.memory_space<vmem>>, vector<1x128xf32>
    %c0_5 = arith.constant 0 : index
    %c0_6 = arith.constant 0 : index
    %3 = vector.load %arg0[%c0_5, %c0_6] : memref<64x4xf32, #tpu.memory_space<vmem>>, vector<64x4xf32>
    %cst = arith.constant dense<0.000000e+00> : vector<64x128xf32>
    %4 = tpu.matmul %3, %0, %cst {dimension_numbers = #tpu.dot_dimension_numbers<[1], [0], [0], [1], [0, 0, 1, 1], [], []>} : vector<64x4xf32>, vector<4x128xf32>, vector<64x128xf32> -> vector<64x128xf32>
    %5 = vector.broadcast %2 : vector<1x128xf32> to vector<64x128xf32>
    %6 = arith.addf %4, %5 : vector<64x128xf32>
    %cst_7 = arith.constant 0.000000e+00 : f32
    %7 = vector.broadcast %cst_7 : f32 to vector<8x32xf32>
    %cst_8 = arith.constant 0.000000e+00 : f32
    %8 = vector.broadcast %cst_8 : f32 to vector<8x32xf32>
    %9 = vector.extract_strided_slice %6 {offsets = [0, 0], sizes = [8, 128], strides = [1, 1]} : vector<64x128xf32> to vector<8x128xf32>
    %cst_9 = arith.constant dense<0.000000e+00> : vector<8x128xf32>
    %10 = tpu.matmul %7, %1, %cst_9 {dimension_numbers = #tpu.dot_dimension_numbers<[1], [0], [0], [1], [0, 0, 1, 1], [], []>} : vector<8x32xf32>, vector<32x128xf32>, vector<8x128xf32> -> vector<8x128xf32>
    %11 = arith.addf %9, %10 : vector<8x128xf32>
    %12 = arith.negf %11 : vector<8x128xf32>
    %13 = math.exp %12 : vector<8x128xf32>
    %cst_10 = arith.constant 1.000000e+00 : f32
    %14 = vector.broadcast %cst_10 : f32 to vector<8x128xf32>
    %15 = arith.addf %14, %13 : vector<8x128xf32>
    %16 = arith.divf %14, %15 : vector<8x128xf32>
    %17 = vector.extract_strided_slice %16 {offsets = [0, 0], sizes = [8, 32], strides = [1, 1]} : vector<8x128xf32> to vector<8x32xf32>
    %18 = vector.extract_strided_slice %16 {offsets = [0, 32], sizes = [8, 32], strides = [1, 1]} : vector<8x128xf32> to vector<8x32xf32>
    %19 = vector.extract_strided_slice %16 {offsets = [0, 64], sizes = [8, 32], strides = [1, 1]} : vector<8x128xf32> to vector<8x32xf32>
    %cst_11 = arith.constant 2.000000e+00 : f32
    %20 = vector.broadcast %cst_11 : f32 to vector<8x32xf32>
    %21 = arith.mulf %20, %19 : vector<8x32xf32>
    %cst_12 = arith.constant 1.000000e+00 : f32
    %22 = vector.broadcast %cst_12 : f32 to vector<8x32xf32>
    %23 = arith.subf %21, %22 : vector<8x32xf32>
    %24 = vector.extract_strided_slice %16 {offsets = [0, 96], sizes = [8, 32], strides = [1, 1]} : vector<8x128xf32> to vector<8x32xf32>
    %25 = arith.mulf %18, %8 : vector<8x32xf32>
    %26 = arith.mulf %17, %23 : vector<8x32xf32>
    %27 = arith.addf %25, %26 : vector<8x32xf32>
    %28 = math.tanh %27 : vector<8x32xf32>
    %29 = arith.mulf %24, %28 : vector<8x32xf32>
    %c0_13 = arith.constant 0 : index
    %c0_14 = arith.constant 0 : index
    %30 = vector.load %arg10[%c0_13, %c0_14] : memref<64x32xf32, #tpu.memory_space<vmem>>, vector<8x32xf32>
    tpu.vector_store %arg10[%c0_13, %c0_14], %29 {strides = array<i32>} : memref<64x32xf32, #tpu.memory_space<vmem>>, vector<8x32xf32>,
    %31 = vector.extract_strided_slice %6 {offsets = [8, 0], sizes = [8, 128], strides = [1, 1]} : vector<64x128xf32> to vector<8x128xf32>
    %cst_15 = arith.constant dense<0.000000e+00> : vector<8x128xf32>
    %32 = tpu.matmul %29, %1, %cst_15 {dimension_numbers = #tpu.dot_dimension_numbers<[1], [0], [0], [1], [0, 0, 1, 1], [], []>} : vector<8x32xf32>, vector<32x128xf32>, vector<8x128xf32> -> vector<8x128xf32>
    %33 = arith.addf %31, %32 : vector<8x128xf32>
    %34 = arith.negf %33 : vector<8x128xf32>
    %35 = math.exp %34 : vector<8x128xf32>
    %cst_16 = arith.constant 1.000000e+00 : f32
    %36 = vector.broadcast %cst_16 : f32 to vector<8x128xf32>
    %37 = arith.addf %36, %35 : vector<8x128xf32>
    %38 = arith.divf %36, %37 : vector<8x128xf32>
    %39 = vector.extract_strided_slice %38 {offsets = [0, 0], sizes = [8, 32], strides = [1, 1]} : vector<8x128xf32> to vector<8x32xf32>
    %40 = vector.extract_strided_slice %38 {offsets = [0, 32], sizes = [8, 32], strides = [1, 1]} : vector<8x128xf32> to vector<8x32xf32>
    %41 = vector.extract_strided_slice %38 {offsets = [0, 64], sizes = [8, 32], strides = [1, 1]} : vector<8x128xf32> to vector<8x32xf32>
    %cst_17 = arith.constant 2.000000e+00 : f32
    %42 = vector.broadcast %cst_17 : f32 to vector<8x32xf32>
    %43 = arith.mulf %42, %41 : vector<8x32xf32>
    %cst_18 = arith.constant 1.000000e+00 : f32
    %44 = vector.broadcast %cst_18 : f32 to vector<8x32xf32>
    %45 = arith.subf %43, %44 : vector<8x32xf32>
    %46 = vector.extract_strided_slice %38 {offsets = [0, 96], sizes = [8, 32], strides = [1, 1]} : vector<8x128xf32> to vector<8x32xf32>
    %47 = arith.mulf %40, %27 : vector<8x32xf32>
    %48 = arith.mulf %39, %45 : vector<8x32xf32>
    %49 = arith.addf %47, %48 : vector<8x32xf32>
    %50 = math.tanh %49 : vector<8x32xf32>
    %51 = arith.mulf %46, %50 : vector<8x32xf32>
    %c8 = arith.constant 8 : index
    %c0_19 = arith.constant 0 : index
    %52 = vector.load %arg10[%c8, %c0_19] : memref<64x32xf32, #tpu.memory_space<vmem>>, vector<8x32xf32>
    tpu.vector_store %arg10[%c8, %c0_19], %51 {strides = array<i32>} : memref<64x32xf32, #tpu.memory_space<vmem>>, vector<8x32xf32>,
    %53 = vector.extract_strided_slice %6 {offsets = [16, 0], sizes = [8, 128], strides = [1, 1]} : vector<64x128xf32> to vector<8x128xf32>
    %cst_20 = arith.constant dense<0.000000e+00> : vector<8x128xf32>
    %54 = tpu.matmul %51, %1, %cst_20 {dimension_numbers = #tpu.dot_dimension_numbers<[1], [0], [0], [1], [0, 0, 1, 1], [], []>} : vector<8x32xf32>, vector<32x128xf32>, vector<8x128xf32> -> vector<8x128xf32>
    %55 = arith.addf %53, %54 : vector<8x128xf32>
    %56 = arith.negf %55 : vector<8x128xf32>
    %57 = math.exp %56 : vector<8x128xf32>
    %cst_21 = arith.constant 1.000000e+00 : f32
    %58 = vector.broadcast %cst_21 : f32 to vector<8x128xf32>
    %59 = arith.addf %58, %57 : vector<8x128xf32>
    %60 = arith.divf %58, %59 : vector<8x128xf32>
    %61 = vector.extract_strided_slice %60 {offsets = [0, 0], sizes = [8, 32], strides = [1, 1]} : vector<8x128xf32> to vector<8x32xf32>
    %62 = vector.extract_strided_slice %60 {offsets = [0, 32], sizes = [8, 32], strides = [1, 1]} : vector<8x128xf32> to vector<8x32xf32>
    %63 = vector.extract_strided_slice %60 {offsets = [0, 64], sizes = [8, 32], strides = [1, 1]} : vector<8x128xf32> to vector<8x32xf32>
    %cst_22 = arith.constant 2.000000e+00 : f32
    %64 = vector.broadcast %cst_22 : f32 to vector<8x32xf32>
    %65 = arith.mulf %64, %63 : vector<8x32xf32>
    %cst_23 = arith.constant 1.000000e+00 : f32
    %66 = vector.broadcast %cst_23 : f32 to vector<8x32xf32>
    %67 = arith.subf %65, %66 : vector<8x32xf32>
    %68 = vector.extract_strided_slice %60 {offsets = [0, 96], sizes = [8, 32], strides = [1, 1]} : vector<8x128xf32> to vector<8x32xf32>
    %69 = arith.mulf %62, %49 : vector<8x32xf32>
    %70 = arith.mulf %61, %67 : vector<8x32xf32>
    %71 = arith.addf %69, %70 : vector<8x32xf32>
    %72 = math.tanh %71 : vector<8x32xf32>
    %73 = arith.mulf %68, %72 : vector<8x32xf32>
    %c16 = arith.constant 16 : index
    %c0_24 = arith.constant 0 : index
    %74 = vector.load %arg10[%c16, %c0_24] : memref<64x32xf32, #tpu.memory_space<vmem>>, vector<8x32xf32>
    tpu.vector_store %arg10[%c16, %c0_24], %73 {strides = array<i32>} : memref<64x32xf32, #tpu.memory_space<vmem>>, vector<8x32xf32>,
    %75 = vector.extract_strided_slice %6 {offsets = [24, 0], sizes = [8, 128], strides = [1, 1]} : vector<64x128xf32> to vector<8x128xf32>
    %cst_25 = arith.constant dense<0.000000e+00> : vector<8x128xf32>
    %76 = tpu.matmul %73, %1, %cst_25 {dimension_numbers = #tpu.dot_dimension_numbers<[1], [0], [0], [1], [0, 0, 1, 1], [], []>} : vector<8x32xf32>, vector<32x128xf32>, vector<8x128xf32> -> vector<8x128xf32>
    %77 = arith.addf %75, %76 : vector<8x128xf32>
    %78 = arith.negf %77 : vector<8x128xf32>
    %79 = math.exp %78 : vector<8x128xf32>
    %cst_26 = arith.constant 1.000000e+00 : f32
    %80 = vector.broadcast %cst_26 : f32 to vector<8x128xf32>
    %81 = arith.addf %80, %79 : vector<8x128xf32>
    %82 = arith.divf %80, %81 : vector<8x128xf32>
    %83 = vector.extract_strided_slice %82 {offsets = [0, 0], sizes = [8, 32], strides = [1, 1]} : vector<8x128xf32> to vector<8x32xf32>
    %84 = vector.extract_strided_slice %82 {offsets = [0, 32], sizes = [8, 32], strides = [1, 1]} : vector<8x128xf32> to vector<8x32xf32>
    %85 = vector.extract_strided_slice %82 {offsets = [0, 64], sizes = [8, 32], strides = [1, 1]} : vector<8x128xf32> to vector<8x32xf32>
    %cst_27 = arith.constant 2.000000e+00 : f32
    %86 = vector.broadcast %cst_27 : f32 to vector<8x32xf32>
    %87 = arith.mulf %86, %85 : vector<8x32xf32>
    %cst_28 = arith.constant 1.000000e+00 : f32
    %88 = vector.broadcast %cst_28 : f32 to vector<8x32xf32>
    %89 = arith.subf %87, %88 : vector<8x32xf32>
    %90 = vector.extract_strided_slice %82 {offsets = [0, 96], sizes = [8, 32], strides = [1, 1]} : vector<8x128xf32> to vector<8x32xf32>
    %91 = arith.mulf %84, %71 : vector<8x32xf32>
    %92 = arith.mulf %83, %89 : vector<8x32xf32>
    %93 = arith.addf %91, %92 : vector<8x32xf32>
    %94 = math.tanh %93 : vector<8x32xf32>
    %95 = arith.mulf %90, %94 : vector<8x32xf32>
    %c24 = arith.constant 24 : index
    %c0_29 = arith.constant 0 : index
    %96 = vector.load %arg10[%c24, %c0_29] : memref<64x32xf32, #tpu.memory_space<vmem>>, vector<8x32xf32>
    tpu.vector_store %arg10[%c24, %c0_29], %95 {strides = array<i32>} : memref<64x32xf32, #tpu.memory_space<vmem>>, vector<8x32xf32>,
    %97 = vector.extract_strided_slice %6 {offsets = [32, 0], sizes = [8, 128], strides = [1, 1]} : vector<64x128xf32> to vector<8x128xf32>
    %cst_30 = arith.constant dense<0.000000e+00> : vector<8x128xf32>
    %98 = tpu.matmul %95, %1, %cst_30 {dimension_numbers = #tpu.dot_dimension_numbers<[1], [0], [0], [1], [0, 0, 1, 1], [], []>} : vector<8x32xf32>, vector<32x128xf32>, vector<8x128xf32> -> vector<8x128xf32>
    %99 = arith.addf %97, %98 : vector<8x128xf32>
    %100 = arith.negf %99 : vector<8x128xf32>
    %101 = math.exp %100 : vector<8x128xf32>
    %cst_31 = arith.constant 1.000000e+00 : f32
    %102 = vector.broadcast %cst_31 : f32 to vector<8x128xf32>
    %103 = arith.addf %102, %101 : vector<8x128xf32>
    %104 = arith.divf %102, %103 : vector<8x128xf32>
    %105 = vector.extract_strided_slice %104 {offsets = [0, 0], sizes = [8, 32], strides = [1, 1]} : vector<8x128xf32> to vector<8x32xf32>
    %106 = vector.extract_strided_slice %104 {offsets = [0, 32], sizes = [8, 32], strides = [1, 1]} : vector<8x128xf32> to vector<8x32xf32>
    %107 = vector.extract_strided_slice %104 {offsets = [0, 64], sizes = [8, 32], strides = [1, 1]} : vector<8x128xf32> to vector<8x32xf32>
    %cst_32 = arith.constant 2.000000e+00 : f32
    %108 = vector.broadcast %cst_32 : f32 to vector<8x32xf32>
    %109 = arith.mulf %108, %107 : vector<8x32xf32>
    %cst_33 = arith.constant 1.000000e+00 : f32
    %110 = vector.broadcast %cst_33 : f32 to vector<8x32xf32>
    %111 = arith.subf %109, %110 : vector<8x32xf32>
    %112 = vector.extract_strided_slice %104 {offsets = [0, 96], sizes = [8, 32], strides = [1, 1]} : vector<8x128xf32> to vector<8x32xf32>
    %113 = arith.mulf %106, %93 : vector<8x32xf32>
    %114 = arith.mulf %105, %111 : vector<8x32xf32>
    %115 = arith.addf %113, %114 : vector<8x32xf32>
    %116 = math.tanh %115 : vector<8x32xf32>
    %117 = arith.mulf %112, %116 : vector<8x32xf32>
    %c32 = arith.constant 32 : index
    %c0_34 = arith.constant 0 : index
    %118 = vector.load %arg10[%c32, %c0_34] : memref<64x32xf32, #tpu.memory_space<vmem>>, vector<8x32xf32>
    tpu.vector_store %arg10[%c32, %c0_34], %117 {strides = array<i32>} : memref<64x32xf32, #tpu.memory_space<vmem>>, vector<8x32xf32>,
    %119 = vector.extract_strided_slice %6 {offsets = [40, 0], sizes = [8, 128], strides = [1, 1]} : vector<64x128xf32> to vector<8x128xf32>
    %cst_35 = arith.constant dense<0.000000e+00> : vector<8x128xf32>
    %120 = tpu.matmul %117, %1, %cst_35 {dimension_numbers = #tpu.dot_dimension_numbers<[1], [0], [0], [1], [0, 0, 1, 1], [], []>} : vector<8x32xf32>, vector<32x128xf32>, vector<8x128xf32> -> vector<8x128xf32>
    %121 = arith.addf %119, %120 : vector<8x128xf32>
    %122 = arith.negf %121 : vector<8x128xf32>
    %123 = math.exp %122 : vector<8x128xf32>
    %cst_36 = arith.constant 1.000000e+00 : f32
    %124 = vector.broadcast %cst_36 : f32 to vector<8x128xf32>
    %125 = arith.addf %124, %123 : vector<8x128xf32>
    %126 = arith.divf %124, %125 : vector<8x128xf32>
    %127 = vector.extract_strided_slice %126 {offsets = [0, 0], sizes = [8, 32], strides = [1, 1]} : vector<8x128xf32> to vector<8x32xf32>
    %128 = vector.extract_strided_slice %126 {offsets = [0, 32], sizes = [8, 32], strides = [1, 1]} : vector<8x128xf32> to vector<8x32xf32>
    %129 = vector.extract_strided_slice %126 {offsets = [0, 64], sizes = [8, 32], strides = [1, 1]} : vector<8x128xf32> to vector<8x32xf32>
    %cst_37 = arith.constant 2.000000e+00 : f32
    %130 = vector.broadcast %cst_37 : f32 to vector<8x32xf32>
    %131 = arith.mulf %130, %129 : vector<8x32xf32>
    %cst_38 = arith.constant 1.000000e+00 : f32
    %132 = vector.broadcast %cst_38 : f32 to vector<8x32xf32>
    %133 = arith.subf %131, %132 : vector<8x32xf32>
    %134 = vector.extract_strided_slice %126 {offsets = [0, 96], sizes = [8, 32], strides = [1, 1]} : vector<8x128xf32> to vector<8x32xf32>
    %135 = arith.mulf %128, %115 : vector<8x32xf32>
    %136 = arith.mulf %127, %133 : vector<8x32xf32>
    %137 = arith.addf %135, %136 : vector<8x32xf32>
    %138 = math.tanh %137 : vector<8x32xf32>
    %139 = arith.mulf %134, %138 : vector<8x32xf32>
    %c40 = arith.constant 40 : index
    %c0_39 = arith.constant 0 : index
    %140 = vector.load %arg10[%c40, %c0_39] : memref<64x32xf32, #tpu.memory_space<vmem>>, vector<8x32xf32>
    tpu.vector_store %arg10[%c40, %c0_39], %139 {strides = array<i32>} : memref<64x32xf32, #tpu.memory_space<vmem>>, vector<8x32xf32>,
    %141 = vector.extract_strided_slice %6 {offsets = [48, 0], sizes = [8, 128], strides = [1, 1]} : vector<64x128xf32> to vector<8x128xf32>
    %cst_40 = arith.constant dense<0.000000e+00> : vector<8x128xf32>
    %142 = tpu.matmul %139, %1, %cst_40 {dimension_numbers = #tpu.dot_dimension_numbers<[1], [0], [0], [1], [0, 0, 1, 1], [], []>} : vector<8x32xf32>, vector<32x128xf32>, vector<8x128xf32> -> vector<8x128xf32>
    %143 = arith.addf %141, %142 : vector<8x128xf32>
    %144 = arith.negf %143 : vector<8x128xf32>
    %145 = math.exp %144 : vector<8x128xf32>
    %cst_41 = arith.constant 1.000000e+00 : f32
    %146 = vector.broadcast %cst_41 : f32 to vector<8x128xf32>
    %147 = arith.addf %146, %145 : vector<8x128xf32>
    %148 = arith.divf %146, %147 : vector<8x128xf32>
    %149 = vector.extract_strided_slice %148 {offsets = [0, 0], sizes = [8, 32], strides = [1, 1]} : vector<8x128xf32> to vector<8x32xf32>
    %150 = vector.extract_strided_slice %148 {offsets = [0, 32], sizes = [8, 32], strides = [1, 1]} : vector<8x128xf32> to vector<8x32xf32>
    %151 = vector.extract_strided_slice %148 {offsets = [0, 64], sizes = [8, 32], strides = [1, 1]} : vector<8x128xf32> to vector<8x32xf32>
    %cst_42 = arith.constant 2.000000e+00 : f32
    %152 = vector.broadcast %cst_42 : f32 to vector<8x32xf32>
    %153 = arith.mulf %152, %151 : vector<8x32xf32>
    %cst_43 = arith.constant 1.000000e+00 : f32
    %154 = vector.broadcast %cst_43 : f32 to vector<8x32xf32>
    %155 = arith.subf %153, %154 : vector<8x32xf32>
    %156 = vector.extract_strided_slice %148 {offsets = [0, 96], sizes = [8, 32], strides = [1, 1]} : vector<8x128xf32> to vector<8x32xf32>
    %157 = arith.mulf %150, %137 : vector<8x32xf32>
    %158 = arith.mulf %149, %155 : vector<8x32xf32>
    %159 = arith.addf %157, %158 : vector<8x32xf32>
    %160 = math.tanh %159 : vector<8x32xf32>
    %161 = arith.mulf %156, %160 : vector<8x32xf32>
    %c48 = arith.constant 48 : index
    %c0_44 = arith.constant 0 : index
    %162 = vector.load %arg10[%c48, %c0_44] : memref<64x32xf32, #tpu.memory_space<vmem>>, vector<8x32xf32>
    tpu.vector_store %arg10[%c48, %c0_44], %161 {strides = array<i32>} : memref<64x32xf32, #tpu.memory_space<vmem>>, vector<8x32xf32>,
    %163 = vector.extract_strided_slice %6 {offsets = [56, 0], sizes = [8, 128], strides = [1, 1]} : vector<64x128xf32> to vector<8x128xf32>
    %cst_45 = arith.constant dense<0.000000e+00> : vector<8x128xf32>
    %164 = tpu.matmul %161, %1, %cst_45 {dimension_numbers = #tpu.dot_dimension_numbers<[1], [0], [0], [1], [0, 0, 1, 1], [], []>} : vector<8x32xf32>, vector<32x128xf32>, vector<8x128xf32> -> vector<8x128xf32>
    %165 = arith.addf %163, %164 : vector<8x128xf32>
    %166 = arith.negf %165 : vector<8x128xf32>
    %167 = math.exp %166 : vector<8x128xf32>
    %cst_46 = arith.constant 1.000000e+00 : f32
    %168 = vector.broadcast %cst_46 : f32 to vector<8x128xf32>
    %169 = arith.addf %168, %167 : vector<8x128xf32>
    %170 = arith.divf %168, %169 : vector<8x128xf32>
    %171 = vector.extract_strided_slice %170 {offsets = [0, 0], sizes = [8, 32], strides = [1, 1]} : vector<8x128xf32> to vector<8x32xf32>
    %172 = vector.extract_strided_slice %170 {offsets = [0, 32], sizes = [8, 32], strides = [1, 1]} : vector<8x128xf32> to vector<8x32xf32>
    %173 = vector.extract_strided_slice %170 {offsets = [0, 64], sizes = [8, 32], strides = [1, 1]} : vector<8x128xf32> to vector<8x32xf32>
    %cst_47 = arith.constant 2.000000e+00 : f32
    %174 = vector.broadcast %cst_47 : f32 to vector<8x32xf32>
    %175 = arith.mulf %174, %173 : vector<8x32xf32>
    %cst_48 = arith.constant 1.000000e+00 : f32
    %176 = vector.broadcast %cst_48 : f32 to vector<8x32xf32>
    %177 = arith.subf %175, %176 : vector<8x32xf32>
    %178 = vector.extract_strided_slice %170 {offsets = [0, 96], sizes = [8, 32], strides = [1, 1]} : vector<8x128xf32> to vector<8x32xf32>
    %179 = arith.mulf %172, %159 : vector<8x32xf32>
    %180 = arith.mulf %171, %177 : vector<8x32xf32>
    %181 = arith.addf %179, %180 : vector<8x32xf32>
    %182 = math.tanh %181 : vector<8x32xf32>
    %183 = arith.mulf %178, %182 : vector<8x32xf32>
    %c56 = arith.constant 56 : index
    %c0_49 = arith.constant 0 : index
    %184 = vector.load %arg10[%c56, %c0_49] : memref<64x32xf32, #tpu.memory_space<vmem>>, vector<8x32xf32>
    tpu.vector_store %arg10[%c56, %c0_49], %183 {strides = array<i32>} : memref<64x32xf32, #tpu.memory_space<vmem>>, vector<8x32xf32>,
    %c0_50 = arith.constant 0 : index
    %c0_51 = arith.constant 0 : index
    %185 = vector.load %arg4[%c0_50, %c0_51] : memref<32x128xf32, #tpu.memory_space<vmem>>, vector<32x128xf32>
    %c0_52 = arith.constant 0 : index
    %c0_53 = arith.constant 0 : index
    %186 = vector.load %arg5[%c0_52, %c0_53] : memref<32x128xf32, #tpu.memory_space<vmem>>, vector<32x128xf32>
    %c0_54 = arith.constant 0 : index
    %c0_55 = arith.constant 0 : index
    %187 = vector.load %arg6[%c0_54, %c0_55] : memref<1x128xf32, #tpu.memory_space<vmem>>, vector<1x128xf32>
    %c0_56 = arith.constant 0 : index
    %c0_57 = arith.constant 0 : index
    %188 = vector.load %arg10[%c0_56, %c0_57] : memref<64x32xf32, #tpu.memory_space<vmem>>, vector<64x32xf32>
    %cst_58 = arith.constant dense<0.000000e+00> : vector<64x128xf32>
    %189 = tpu.matmul %188, %185, %cst_58 {dimension_numbers = #tpu.dot_dimension_numbers<[1], [0], [0], [1], [0, 0, 1, 1], [], []>} : vector<64x32xf32>, vector<32x128xf32>, vector<64x128xf32> -> vector<64x128xf32>
    %190 = vector.broadcast %187 : vector<1x128xf32> to vector<64x128xf32>
    %191 = arith.addf %189, %190 : vector<64x128xf32>
    %cst_59 = arith.constant 0.000000e+00 : f32
    %192 = vector.broadcast %cst_59 : f32 to vector<8x32xf32>
    %cst_60 = arith.constant 0.000000e+00 : f32
    %193 = vector.broadcast %cst_60 : f32 to vector<8x32xf32>
    %194 = vector.extract_strided_slice %191 {offsets = [0, 0], sizes = [8, 128], strides = [1, 1]} : vector<64x128xf32> to vector<8x128xf32>
    %cst_61 = arith.constant dense<0.000000e+00> : vector<8x128xf32>
    %195 = tpu.matmul %192, %186, %cst_61 {dimension_numbers = #tpu.dot_dimension_numbers<[1], [0], [0], [1], [0, 0, 1, 1], [], []>} : vector<8x32xf32>, vector<32x128xf32>, vector<8x128xf32> -> vector<8x128xf32>
    %196 = arith.addf %194, %195 : vector<8x128xf32>
    %197 = arith.negf %196 : vector<8x128xf32>
    %198 = math.exp %197 : vector<8x128xf32>
    %cst_62 = arith.constant 1.000000e+00 : f32
    %199 = vector.broadcast %cst_62 : f32 to vector<8x128xf32>
    %200 = arith.addf %199, %198 : vector<8x128xf32>
    %201 = arith.divf %199, %200 : vector<8x128xf32>
    %202 = vector.extract_strided_slice %201 {offsets = [0, 0], sizes = [8, 32], strides = [1, 1]} : vector<8x128xf32> to vector<8x32xf32>
    %203 = vector.extract_strided_slice %201 {offsets = [0, 32], sizes = [8, 32], strides = [1, 1]} : vector<8x128xf32> to vector<8x32xf32>
    %204 = vector.extract_strided_slice %201 {offsets = [0, 64], sizes = [8, 32], strides = [1, 1]} : vector<8x128xf32> to vector<8x32xf32>
    %cst_63 = arith.constant 2.000000e+00 : f32
    %205 = vector.broadcast %cst_63 : f32 to vector<8x32xf32>
    %206 = arith.mulf %205, %204 : vector<8x32xf32>
    %cst_64 = arith.constant 1.000000e+00 : f32
    %207 = vector.broadcast %cst_64 : f32 to vector<8x32xf32>
    %208 = arith.subf %206, %207 : vector<8x32xf32>
    %209 = vector.extract_strided_slice %201 {offsets = [0, 96], sizes = [8, 32], strides = [1, 1]} : vector<8x128xf32> to vector<8x32xf32>
    %210 = arith.mulf %203, %193 : vector<8x32xf32>
    %211 = arith.mulf %202, %208 : vector<8x32xf32>
    %212 = arith.addf %210, %211 : vector<8x32xf32>
    %213 = math.tanh %212 : vector<8x32xf32>
    %214 = arith.mulf %209, %213 : vector<8x32xf32>
    %215 = vector.extract_strided_slice %191 {offsets = [8, 0], sizes = [8, 128], strides = [1, 1]} : vector<64x128xf32> to vector<8x128xf32>
    %cst_65 = arith.constant dense<0.000000e+00> : vector<8x128xf32>
    %216 = tpu.matmul %214, %186, %cst_65 {dimension_numbers = #tpu.dot_dimension_numbers<[1], [0], [0], [1], [0, 0, 1, 1], [], []>} : vector<8x32xf32>, vector<32x128xf32>, vector<8x128xf32> -> vector<8x128xf32>
    %217 = arith.addf %215, %216 : vector<8x128xf32>
    %218 = arith.negf %217 : vector<8x128xf32>
    %219 = math.exp %218 : vector<8x128xf32>
    %cst_66 = arith.constant 1.000000e+00 : f32
    %220 = vector.broadcast %cst_66 : f32 to vector<8x128xf32>
    %221 = arith.addf %220, %219 : vector<8x128xf32>
    %222 = arith.divf %220, %221 : vector<8x128xf32>
    %223 = vector.extract_strided_slice %222 {offsets = [0, 0], sizes = [8, 32], strides = [1, 1]} : vector<8x128xf32> to vector<8x32xf32>
    %224 = vector.extract_strided_slice %222 {offsets = [0, 32], sizes = [8, 32], strides = [1, 1]} : vector<8x128xf32> to vector<8x32xf32>
    %225 = vector.extract_strided_slice %222 {offsets = [0, 64], sizes = [8, 32], strides = [1, 1]} : vector<8x128xf32> to vector<8x32xf32>
    %cst_67 = arith.constant 2.000000e+00 : f32
    %226 = vector.broadcast %cst_67 : f32 to vector<8x32xf32>
    %227 = arith.mulf %226, %225 : vector<8x32xf32>
    %cst_68 = arith.constant 1.000000e+00 : f32
    %228 = vector.broadcast %cst_68 : f32 to vector<8x32xf32>
    %229 = arith.subf %227, %228 : vector<8x32xf32>
    %230 = vector.extract_strided_slice %222 {offsets = [0, 96], sizes = [8, 32], strides = [1, 1]} : vector<8x128xf32> to vector<8x32xf32>
    %231 = arith.mulf %224, %212 : vector<8x32xf32>
    %232 = arith.mulf %223, %229 : vector<8x32xf32>
    %233 = arith.addf %231, %232 : vector<8x32xf32>
    %234 = math.tanh %233 : vector<8x32xf32>
    %235 = arith.mulf %230, %234 : vector<8x32xf32>
    %236 = vector.extract_strided_slice %191 {offsets = [16, 0], sizes = [8, 128], strides = [1, 1]} : vector<64x128xf32> to vector<8x128xf32>
    %cst_69 = arith.constant dense<0.000000e+00> : vector<8x128xf32>
    %237 = tpu.matmul %235, %186, %cst_69 {dimension_numbers = #tpu.dot_dimension_numbers<[1], [0], [0], [1], [0, 0, 1, 1], [], []>} : vector<8x32xf32>, vector<32x128xf32>, vector<8x128xf32> -> vector<8x128xf32>
    %238 = arith.addf %236, %237 : vector<8x128xf32>
    %239 = arith.negf %238 : vector<8x128xf32>
    %240 = math.exp %239 : vector<8x128xf32>
    %cst_70 = arith.constant 1.000000e+00 : f32
    %241 = vector.broadcast %cst_70 : f32 to vector<8x128xf32>
    %242 = arith.addf %241, %240 : vector<8x128xf32>
    %243 = arith.divf %241, %242 : vector<8x128xf32>
    %244 = vector.extract_strided_slice %243 {offsets = [0, 0], sizes = [8, 32], strides = [1, 1]} : vector<8x128xf32> to vector<8x32xf32>
    %245 = vector.extract_strided_slice %243 {offsets = [0, 32], sizes = [8, 32], strides = [1, 1]} : vector<8x128xf32> to vector<8x32xf32>
    %246 = vector.extract_strided_slice %243 {offsets = [0, 64], sizes = [8, 32], strides = [1, 1]} : vector<8x128xf32> to vector<8x32xf32>
    %cst_71 = arith.constant 2.000000e+00 : f32
    %247 = vector.broadcast %cst_71 : f32 to vector<8x32xf32>
    %248 = arith.mulf %247, %246 : vector<8x32xf32>
    %cst_72 = arith.constant 1.000000e+00 : f32
    %249 = vector.broadcast %cst_72 : f32 to vector<8x32xf32>
    %250 = arith.subf %248, %249 : vector<8x32xf32>
    %251 = vector.extract_strided_slice %243 {offsets = [0, 96], sizes = [8, 32], strides = [1, 1]} : vector<8x128xf32> to vector<8x32xf32>
    %252 = arith.mulf %245, %233 : vector<8x32xf32>
    %253 = arith.mulf %244, %250 : vector<8x32xf32>
    %254 = arith.addf %252, %253 : vector<8x32xf32>
    %255 = math.tanh %254 : vector<8x32xf32>
    %256 = arith.mulf %251, %255 : vector<8x32xf32>
    %257 = vector.extract_strided_slice %191 {offsets = [24, 0], sizes = [8, 128], strides = [1, 1]} : vector<64x128xf32> to vector<8x128xf32>
    %cst_73 = arith.constant dense<0.000000e+00> : vector<8x128xf32>
    %258 = tpu.matmul %256, %186, %cst_73 {dimension_numbers = #tpu.dot_dimension_numbers<[1], [0], [0], [1], [0, 0, 1, 1], [], []>} : vector<8x32xf32>, vector<32x128xf32>, vector<8x128xf32> -> vector<8x128xf32>
    %259 = arith.addf %257, %258 : vector<8x128xf32>
    %260 = arith.negf %259 : vector<8x128xf32>
    %261 = math.exp %260 : vector<8x128xf32>
    %cst_74 = arith.constant 1.000000e+00 : f32
    %262 = vector.broadcast %cst_74 : f32 to vector<8x128xf32>
    %263 = arith.addf %262, %261 : vector<8x128xf32>
    %264 = arith.divf %262, %263 : vector<8x128xf32>
    %265 = vector.extract_strided_slice %264 {offsets = [0, 0], sizes = [8, 32], strides = [1, 1]} : vector<8x128xf32> to vector<8x32xf32>
    %266 = vector.extract_strided_slice %264 {offsets = [0, 32], sizes = [8, 32], strides = [1, 1]} : vector<8x128xf32> to vector<8x32xf32>
    %267 = vector.extract_strided_slice %264 {offsets = [0, 64], sizes = [8, 32], strides = [1, 1]} : vector<8x128xf32> to vector<8x32xf32>
    %cst_75 = arith.constant 2.000000e+00 : f32
    %268 = vector.broadcast %cst_75 : f32 to vector<8x32xf32>
    %269 = arith.mulf %268, %267 : vector<8x32xf32>
    %cst_76 = arith.constant 1.000000e+00 : f32
    %270 = vector.broadcast %cst_76 : f32 to vector<8x32xf32>
    %271 = arith.subf %269, %270 : vector<8x32xf32>
    %272 = vector.extract_strided_slice %264 {offsets = [0, 96], sizes = [8, 32], strides = [1, 1]} : vector<8x128xf32> to vector<8x32xf32>
    %273 = arith.mulf %266, %254 : vector<8x32xf32>
    %274 = arith.mulf %265, %271 : vector<8x32xf32>
    %275 = arith.addf %273, %274 : vector<8x32xf32>
    %276 = math.tanh %275 : vector<8x32xf32>
    %277 = arith.mulf %272, %276 : vector<8x32xf32>
    %278 = vector.extract_strided_slice %191 {offsets = [32, 0], sizes = [8, 128], strides = [1, 1]} : vector<64x128xf32> to vector<8x128xf32>
    %cst_77 = arith.constant dense<0.000000e+00> : vector<8x128xf32>
    %279 = tpu.matmul %277, %186, %cst_77 {dimension_numbers = #tpu.dot_dimension_numbers<[1], [0], [0], [1], [0, 0, 1, 1], [], []>} : vector<8x32xf32>, vector<32x128xf32>, vector<8x128xf32> -> vector<8x128xf32>
    %280 = arith.addf %278, %279 : vector<8x128xf32>
    %281 = arith.negf %280 : vector<8x128xf32>
    %282 = math.exp %281 : vector<8x128xf32>
    %cst_78 = arith.constant 1.000000e+00 : f32
    %283 = vector.broadcast %cst_78 : f32 to vector<8x128xf32>
    %284 = arith.addf %283, %282 : vector<8x128xf32>
    %285 = arith.divf %283, %284 : vector<8x128xf32>
    %286 = vector.extract_strided_slice %285 {offsets = [0, 0], sizes = [8, 32], strides = [1, 1]} : vector<8x128xf32> to vector<8x32xf32>
    %287 = vector.extract_strided_slice %285 {offsets = [0, 32], sizes = [8, 32], strides = [1, 1]} : vector<8x128xf32> to vector<8x32xf32>
    %288 = vector.extract_strided_slice %285 {offsets = [0, 64], sizes = [8, 32], strides = [1, 1]} : vector<8x128xf32> to vector<8x32xf32>
    %cst_79 = arith.constant 2.000000e+00 : f32
    %289 = vector.broadcast %cst_79 : f32 to vector<8x32xf32>
    %290 = arith.mulf %289, %288 : vector<8x32xf32>
    %cst_80 = arith.constant 1.000000e+00 : f32
    %291 = vector.broadcast %cst_80 : f32 to vector<8x32xf32>
    %292 = arith.subf %290, %291 : vector<8x32xf32>
    %293 = vector.extract_strided_slice %285 {offsets = [0, 96], sizes = [8, 32], strides = [1, 1]} : vector<8x128xf32> to vector<8x32xf32>
    %294 = arith.mulf %287, %275 : vector<8x32xf32>
    %295 = arith.mulf %286, %292 : vector<8x32xf32>
    %296 = arith.addf %294, %295 : vector<8x32xf32>
    %297 = math.tanh %296 : vector<8x32xf32>
    %298 = arith.mulf %293, %297 : vector<8x32xf32>
    %299 = vector.extract_strided_slice %191 {offsets = [40, 0], sizes = [8, 128], strides = [1, 1]} : vector<64x128xf32> to vector<8x128xf32>
    %cst_81 = arith.constant dense<0.000000e+00> : vector<8x128xf32>
    %300 = tpu.matmul %298, %186, %cst_81 {dimension_numbers = #tpu.dot_dimension_numbers<[1], [0], [0], [1], [0, 0, 1, 1], [], []>} : vector<8x32xf32>, vector<32x128xf32>, vector<8x128xf32> -> vector<8x128xf32>
    %301 = arith.addf %299, %300 : vector<8x128xf32>
    %302 = arith.negf %301 : vector<8x128xf32>
    %303 = math.exp %302 : vector<8x128xf32>
    %cst_82 = arith.constant 1.000000e+00 : f32
    %304 = vector.broadcast %cst_82 : f32 to vector<8x128xf32>
    %305 = arith.addf %304, %303 : vector<8x128xf32>
    %306 = arith.divf %304, %305 : vector<8x128xf32>
    %307 = vector.extract_strided_slice %306 {offsets = [0, 0], sizes = [8, 32], strides = [1, 1]} : vector<8x128xf32> to vector<8x32xf32>
    %308 = vector.extract_strided_slice %306 {offsets = [0, 32], sizes = [8, 32], strides = [1, 1]} : vector<8x128xf32> to vector<8x32xf32>
    %309 = vector.extract_strided_slice %306 {offsets = [0, 64], sizes = [8, 32], strides = [1, 1]} : vector<8x128xf32> to vector<8x32xf32>
    %cst_83 = arith.constant 2.000000e+00 : f32
    %310 = vector.broadcast %cst_83 : f32 to vector<8x32xf32>
    %311 = arith.mulf %310, %309 : vector<8x32xf32>
    %cst_84 = arith.constant 1.000000e+00 : f32
    %312 = vector.broadcast %cst_84 : f32 to vector<8x32xf32>
    %313 = arith.subf %311, %312 : vector<8x32xf32>
    %314 = vector.extract_strided_slice %306 {offsets = [0, 96], sizes = [8, 32], strides = [1, 1]} : vector<8x128xf32> to vector<8x32xf32>
    %315 = arith.mulf %308, %296 : vector<8x32xf32>
    %316 = arith.mulf %307, %313 : vector<8x32xf32>
    %317 = arith.addf %315, %316 : vector<8x32xf32>
    %318 = math.tanh %317 : vector<8x32xf32>
    %319 = arith.mulf %314, %318 : vector<8x32xf32>
    %320 = vector.extract_strided_slice %191 {offsets = [48, 0], sizes = [8, 128], strides = [1, 1]} : vector<64x128xf32> to vector<8x128xf32>
    %cst_85 = arith.constant dense<0.000000e+00> : vector<8x128xf32>
    %321 = tpu.matmul %319, %186, %cst_85 {dimension_numbers = #tpu.dot_dimension_numbers<[1], [0], [0], [1], [0, 0, 1, 1], [], []>} : vector<8x32xf32>, vector<32x128xf32>, vector<8x128xf32> -> vector<8x128xf32>
    %322 = arith.addf %320, %321 : vector<8x128xf32>
    %323 = arith.negf %322 : vector<8x128xf32>
    %324 = math.exp %323 : vector<8x128xf32>
    %cst_86 = arith.constant 1.000000e+00 : f32
    %325 = vector.broadcast %cst_86 : f32 to vector<8x128xf32>
    %326 = arith.addf %325, %324 : vector<8x128xf32>
    %327 = arith.divf %325, %326 : vector<8x128xf32>
    %328 = vector.extract_strided_slice %327 {offsets = [0, 0], sizes = [8, 32], strides = [1, 1]} : vector<8x128xf32> to vector<8x32xf32>
    %329 = vector.extract_strided_slice %327 {offsets = [0, 32], sizes = [8, 32], strides = [1, 1]} : vector<8x128xf32> to vector<8x32xf32>
    %330 = vector.extract_strided_slice %327 {offsets = [0, 64], sizes = [8, 32], strides = [1, 1]} : vector<8x128xf32> to vector<8x32xf32>
    %cst_87 = arith.constant 2.000000e+00 : f32
    %331 = vector.broadcast %cst_87 : f32 to vector<8x32xf32>
    %332 = arith.mulf %331, %330 : vector<8x32xf32>
    %cst_88 = arith.constant 1.000000e+00 : f32
    %333 = vector.broadcast %cst_88 : f32 to vector<8x32xf32>
    %334 = arith.subf %332, %333 : vector<8x32xf32>
    %335 = vector.extract_strided_slice %327 {offsets = [0, 96], sizes = [8, 32], strides = [1, 1]} : vector<8x128xf32> to vector<8x32xf32>
    %336 = arith.mulf %329, %317 : vector<8x32xf32>
    %337 = arith.mulf %328, %334 : vector<8x32xf32>
    %338 = arith.addf %336, %337 : vector<8x32xf32>
    %339 = math.tanh %338 : vector<8x32xf32>
    %340 = arith.mulf %335, %339 : vector<8x32xf32>
    %341 = vector.extract_strided_slice %191 {offsets = [56, 0], sizes = [8, 128], strides = [1, 1]} : vector<64x128xf32> to vector<8x128xf32>
    %cst_89 = arith.constant dense<0.000000e+00> : vector<8x128xf32>
    %342 = tpu.matmul %340, %186, %cst_89 {dimension_numbers = #tpu.dot_dimension_numbers<[1], [0], [0], [1], [0, 0, 1, 1], [], []>} : vector<8x32xf32>, vector<32x128xf32>, vector<8x128xf32> -> vector<8x128xf32>
    %343 = arith.addf %341, %342 : vector<8x128xf32>
    %344 = arith.negf %343 : vector<8x128xf32>
    %345 = math.exp %344 : vector<8x128xf32>
    %cst_90 = arith.constant 1.000000e+00 : f32
    %346 = vector.broadcast %cst_90 : f32 to vector<8x128xf32>
    %347 = arith.addf %346, %345 : vector<8x128xf32>
    %348 = arith.divf %346, %347 : vector<8x128xf32>
    %349 = vector.extract_strided_slice %348 {offsets = [0, 0], sizes = [8, 32], strides = [1, 1]} : vector<8x128xf32> to vector<8x32xf32>
    %350 = vector.extract_strided_slice %348 {offsets = [0, 32], sizes = [8, 32], strides = [1, 1]} : vector<8x128xf32> to vector<8x32xf32>
    %351 = vector.extract_strided_slice %348 {offsets = [0, 64], sizes = [8, 32], strides = [1, 1]} : vector<8x128xf32> to vector<8x32xf32>
    %cst_91 = arith.constant 2.000000e+00 : f32
    %352 = vector.broadcast %cst_91 : f32 to vector<8x32xf32>
    %353 = arith.mulf %352, %351 : vector<8x32xf32>
    %cst_92 = arith.constant 1.000000e+00 : f32
    %354 = vector.broadcast %cst_92 : f32 to vector<8x32xf32>
    %355 = arith.subf %353, %354 : vector<8x32xf32>
    %356 = vector.extract_strided_slice %348 {offsets = [0, 96], sizes = [8, 32], strides = [1, 1]} : vector<8x128xf32> to vector<8x32xf32>
    %357 = arith.mulf %350, %338 : vector<8x32xf32>
    %358 = arith.mulf %349, %355 : vector<8x32xf32>
    %359 = arith.addf %357, %358 : vector<8x32xf32>
    %360 = math.tanh %359 : vector<8x32xf32>
    %361 = arith.mulf %356, %360 : vector<8x32xf32>
    %c0_93 = arith.constant 0 : index
    %c0_94 = arith.constant 0 : index
    %362 = vector.load %arg7[%c0_93, %c0_94] : memref<32x128xf32, #tpu.memory_space<vmem>>, vector<32x128xf32>
    %cst_95 = arith.constant dense<0.000000e+00> : vector<8x128xf32>
    %363 = tpu.matmul %361, %362, %cst_95 {dimension_numbers = #tpu.dot_dimension_numbers<[1], [0], [0], [1], [0, 0, 1, 1], [], []>} : vector<8x32xf32>, vector<32x128xf32>, vector<8x128xf32> -> vector<8x128xf32>
    %c0_96 = arith.constant 0 : index
    %c0_97 = arith.constant 0 : index
    %364 = vector.load %arg8[%c0_96, %c0_97] : memref<1x128xf32, #tpu.memory_space<vmem>>, vector<1x128xf32>
    %365 = vector.broadcast %364 : vector<1x128xf32> to vector<8x128xf32>
    %366 = arith.addf %363, %365 : vector<8x128xf32>
    %c0_98 = arith.constant 0 : index
    %c0_99 = arith.constant 0 : index
    %367 = vector.load %arg9[%c0_98, %c0_99] : memref<8x128xf32, #tpu.memory_space<vmem>>, vector<8x128xf32>
    tpu.vector_store %arg9[%c0_98, %c0_99], %366 {strides = array<i32>} : memref<8x128xf32, #tpu.memory_space<vmem>>, vector<8x128xf32>,
    return
  }
}

</mosaic_0001>

<bundles_post_ra>
// kernel: tpu_custom_call.1
= control target key start
LH: loop header
LB: loop body
LE: loop exit
PB: predicated region body
PF: predicated region fallthrough
CT: control target
= control target key end

     0   :  { %14 = vsyncpa [#allocation4], 0  ;;  %s3207_s0 = inlined_call_operand.vmem [shape: f32[64,4], index: 0, kind: input, shape index: {}]   ;;  %s3208_s1 = inlined_call_operand.vmem [shape: f32[4,128], index: 1, kind: input, shape index: {}]   ;;  %s3209_s2 = inlined_call_operand.vmem [shape: f32[32,128], index: 2, kind: input, shape index: {}]   ;;  %s3210_s3 = inlined_call_operand.vmem [shape: f32[1,128], index: 3, kind: input, shape index: {}]   ;;  %s3211_s4 = inlined_call_operand.vmem [shape: f32[32,128], index: 4, kind: input, shape index: {}]   ;;  %s3212_s5 = inlined_call_operand.hbm [shape: f32[32,128], index: 5, kind: input, shape index: {}]   ;;  %s3213_s6 = inlined_call_operand.vmem [shape: f32[1,128], index: 6, kind: input, shape index: {}]   ;;  %s3214_s7 = inlined_call_operand.hbm [shape: f32[32,128], index: 7, kind: input, shape index: {}]   ;;  %s3215_s8 = inlined_call_operand.vmem [shape: f32[1,128], index: 8, kind: input, shape index: {}]   ;;  %s3216_s9 = inlined_call_operand.hbm [shape: f32[8,128], index: 9, kind: output, shape index: {}]  }
   0x1   :  { %15 = vsyncpa [#allocation7], 0 }
   0x2   :  { %16 = vsyncpa [#allocation5], 0  ;;  %s2781_s30 = smov [#allocation3]   ;;  %s2709_s13 = scalar_lea.hbm %s3212_s5, 512 }
   0x3   :  { %s32_s10 = sshll.u32 %s2781_s30, 4  ;;  %p2710_p0 = scmp.ne.s32.totalorder %s3212_s5, %s2709_s13  ;;  %s33_s10 = int_to_ptr.vmem [resolvable:$true] %s32_s10 }
   0x4   :  { %p2713_p1 = scmp.lt.u32.totalorder %s2709_s13, %s3212_s5 }
   0x6   :  { %p2715_p2 = pnand %p2713_p1, %p2710_p0 }
   0x8   :  { %2718 = shalt.err (!%p2715_p2)
}
   0x9   :  { %s2719_s18 = scalar_lea.vmem %s33_s10, 512  ;;  %p2724_p4 = scmp.lt.s32.totalorder %s33_s10, %s33_s10 }
   0xa   :  { %p2720_p3 = scmp.ne.s32.totalorder %s33_s10, %s2719_s18  ;;  %p2725_p5 = scmp.lt.s32.totalorder %s2719_s18, %s2719_s18 }
   0xc   :  { %p2726_p6 = por %p2725_p5, %p2724_p4 }
   0xe   :  { %p2727_p7 = pnand %p2726_p6, %p2720_p3 }
  0x10   :  { %2730 = shalt.err (!%p2727_p7)
}
  0x11   :  { %s2782_s19 = smov 128   ;;  %s2783_s20 = smov 8  }
  0x12   :  { %38 = dma.hbm_to_vmem [thread:$0]  %s3212_s5, 512, %s33_s10, [#allocation4], %s2782_s19, %s2782_s19, %s2783_s20  }
  0x13   :  { %s2784_s23 = smov [#allocation6]   ;;  %s2731_s27 = scalar_lea.hbm %s3214_s7, 512 }
  0x14   :  { %s46_s24 = sshll.u32 %s2784_s23, 4  ;;  %p2732_p8 = scmp.ne.s32.totalorder %s3214_s7, %s2731_s27  ;;  %s47_s24 = int_to_ptr.vmem [resolvable:$true] %s46_s24 }
  0x15   :  { %p2735_p9 = scmp.lt.u32.totalorder %s2731_s27, %s3214_s7 }
  0x17   :  { %p2737_p10 = pnand %p2735_p9, %p2732_p8 }
  0x19   :  { %2740 = shalt.err (!%p2737_p10)
}
  0x1a   :  { %s2741_s12 = scalar_lea.vmem %s47_s24, 512  ;;  %p2746_p12 = scmp.lt.s32.totalorder %s47_s24, %s47_s24 }
  0x1b   :  { %p2742_p11 = scmp.ne.s32.totalorder %s47_s24, %s2741_s12  ;;  %p2747_p13 = scmp.lt.s32.totalorder %s2741_s12, %s2741_s12 }
  0x1d   :  { %p2748_p0 = por %p2747_p13, %p2746_p12 }
  0x1f   :  { %p2749_p1 = pnand %p2748_p0, %p2742_p11 }
  0x21   :  { %2752 = shalt.err (!%p2749_p1)
}
  0x22   :  { %52 = dma.hbm_to_vmem [thread:$0]  %s3214_s7, 512, %s47_s24, [#allocation7], %s2782_s19, %s2782_s19, %s2783_s20  }
  0x23   :  { %2775 = dma.done.wait [#allocation4], 512  }
  0x24   :  { %2776 = vsyncadd [#allocation4], 4294966784 }
  0x25   :  { %2777 = dma.done.wait [#allocation7], 512  }
  0x26   :  { %2778 = vsyncadd [#allocation7], 4294966784  ;;  %v2785_v0 = vmov 0.0|0.0   ;;  %vm2786_vm0 = vmmov 0   ;;  %v2787_v1 = vmov 0.0   ;;  %vm106_vm1 = vcmask 1043456  }
  0x27   :  { %2493 = vmatprep.subr.bf16.mxu1 %v2785_v0  ;;  %2294 = vmatprep.mubr.msk.f32.mxu1 %vm2786_vm0, %v2787_v1  ;;  %vm81_vm2 = vcmask 31744   ;;  %v62_v2 = vld [vmem:[%s3209_s2] sm:$0xff]  ;;  %v63_v3 = vld [vmem:[%s3209_s2 + $0x8] sm:$0xff]  ;;  %v64_v8 = vld [vmem:[%s3209_s2 + $0x10] sm:$0xff]  ;;  %s2788_s26 = smov 64   ;;  %vm215_vm3 = vcmask 261120  }
  0x28   :  { %v61_v4 = vld [vmem:[%s3208_s1] sm:$0xf]  ;;  %v2877_v5 = vpack.c.bf16 %v63_v3, %v62_v2  ;;  %v68_v7 = vld [vmem:[%s3207_s0 + $0x8] sm:$0xff]  ;;  %v65_v9 = vld [vmem:[%s3209_s2 + $0x18] sm:$0xff]  ;;  %s2790_s1 = smov [#allocation8]  }
  0x29   :  { %2272 = vmatprep.subr.msk.mxu0 %vm106_vm1, %v61_v4  ;;  %v67_v6 = vld [vmem:[%s3207_s0] sm:$0xff]  ;;  %v2894_v10 = vpack.c.bf16 %v65_v9, %v64_v8  ;;  %v69_v48 = vld [vmem:[%s3207_s0 + $0x10] sm:$0xff]  ;;  %v70_v49 = vld [vmem:[%s3207_s0 + $0x18] sm:$0xff]  ;;  %s2089_s2 = sshll.u32 %s2790_s1, 4  ;;  %s2090_s2 = int_to_ptr.vmem [resolvable:$true] %s2089_s2 }
  0x2a   :  { %2273 = vmatpush3.msk.msra.mxu0 %vm106_vm1, %v61_v4  ;;  %2274 = vmatprep.mubr.msk.f32.mxu0 %vm81_vm2, %v67_v6  ;;  %v2914_v12 = vld [vmem:[%s3210_s3] ss:$0 sm:$0xff]  ;;  %s2789_s3 = smov 32   ;;  %v72_v51 = vld [vmem:[%s3207_s0 + $0x28] sm:$0xff]  ;;  %v73_v52 = vld [vmem:[%s3207_s0 + $0x30] sm:$0xff]  ;;  %s2753_s25 = scalar_lea.vmem %s2090_s2, 128 }
  0x2b   :  { %2495 = vmatpush3.bf16.msra.mxu1 %v2877_v5  ;;  %2275 = vmatmul.mubr.msk.f32.vlgmr.msra.gmra.mrb[0].mxu0 %vm81_vm2, %v68_v7  ;;  %v71_v50 = vld [vmem:[%s3207_s0 + $0x20] sm:$0xff]  ;;  %v74_v53 = vld [vmem:[%s3207_s0 + $0x38] sm:$0xff]  ;;  %p2754_p2 = scmp.ne.s32.totalorder %s2090_s2, %s2753_s25  ;;  %p2758_p3 = scmp.lt.s32.totalorder %s2090_s2, %s2090_s2 }
  0x2c   :  { %2496 = vmatprep.subr.bf16.mxu1 %v2785_v0  ;;  %2505 = vmatprep.subr.bf16.mxu0 %v2785_v0  ;;  %p2759_p4 = scmp.lt.s32.totalorder %s2753_s25, %s2753_s25 }
  0x2d   :  { %2507 = vmatpush3.bf16.msra.mxu0 %v2877_v5  ;;  %2277 = vmatprep.mubr.msk.f32.mxu0 %vm81_vm2, %v69_v48 }
  0x2e   :  { %2508 = vmatprep.subr.bf16.mxu0 %v2785_v0  ;;  %p2760_p5 = por %p2759_p4, %p2758_p3 }
  0x2f   :  { %2498 = vmatpush3.bf16.msra.mxu1 %v2894_v10  ;;  %2278 = vmatmul.mubr.msk.f32.gmra.mrb[2].mxu0 %vm81_vm2, %v70_v49 }
  0x30   :  { %2499 = vmatprep.subr.bf16.mxu1 %v2785_v0  ;;  %2280 = vmatprep.mubr.msk.f32.mxu0 %vm81_vm2, %v71_v50  ;;  %p2761_p6 = pnand %p2760_p5, %p2754_p2 }
  0x31   :  { %2510 = vmatpush3.bf16.msra.mxu0 %v2894_v10 }
  0x32   :  { %2295 = vmatmul.mubr.f32.vlgmr.msra.gmra.mrb[0].mxu1 %v2787_v1  ;;  %2517 = vmatprep.subr.bf16.mxu0 %v2785_v0 }
  0x33   :  { %2501 = vmatpush3.bf16.msra.mxu1 %v2877_v5  ;;  %2305 = vmatprep.mubr.msk.f32.mxu1 %vm2786_vm0, %v2787_v1 }
  0x34   :  { %2502 = vmatprep.subr.bf16.mxu1 %v2785_v0  ;;  %2281 = vmatmul.mubr.msk.f32.gmra.mrb[4].mxu0 %vm81_vm2, %v72_v51 }
  0x35   :  { %2283 = vmatprep.mubr.msk.f32.mxu0 %vm81_vm2, %v73_v52 }
  0x37   :  { %2504 = vmatpush3.bf16.msra.mxu1 %v2894_v10 }
  0x38   :  { %2511 = vmatprep.subr.bf16.mxu1 %v2785_v0  ;;  %2284 = vmatmul.mubr.msk.f32.gmra.mrb[6].mxu0 %vm81_vm2, %v74_v53 }
  0x39   :  { %2316 = vmatprep.mubr.msk.f32.mxu0 %vm2786_vm0, %v2787_v1 }
  0xfe   :  { %v2276_v11 = vpop.f32.mrb[0].mxu0 }
  0xff   :  { %v176_v13 = vpop.f32.mrb[1].mxu0  ;;  %v182_v33 = vadd.f32 %v2276_v11, %v2914_v12 }
 0x100   :  { %v177_v14 = vadd.f32 %v2914_v12, %v176_v13 }
 0x102   :  { %v2279_v57 = vpop.f32.mrb[2].mxu0 }
 0x103   :  { %v186_v58 = vpop.f32.mrb[3].mxu0 }
 0x104   :  { %v187_v2 = vadd.f32 %v2914_v12, %v186_v58 }
 0x105   :  { %v285_v15 = vpop.f32.mrb[0].mxu1 }
 0x106   :  { %v289_v16 = vadd.f32 %v285_v15, %v177_v14  ;;  %v2296_v17 = vpop.f32.mrb[1].mxu1 }
 0x107   :  { %v2960_v59 = vpop.f32.mrb[4].mxu0 }
 0x108   :  { %v2109_v18 = vmul.f32 -1.442695, %v289_v16  ;;  %v2962_v60 = vpop.f32.mrb[5].mxu0 }
 0x10a   :  { %2613 = vpow2.f32 %v2109_v18 }
 0x10b   :  { %v2964_v61 = vpop.f32.mrb[6].mxu0 }
 0x10c   :  { %v2966_v62 = vpop.f32.mrb[7].mxu0 }
 0x114   :  { %v2614_v19 = vpop.eup %2613 }
 0x115   :  { %v293_v20 = vadd.f32 1.0, %v2614_v19 }
 0x117   :  { %2615 = vrcp.f32 %v293_v20 }
 0x121   :  { %v2616_v21 = vpop.eup %2615 }
 0x122   :  { %v296_v22 = vmul.f32 2.0, %v2616_v21  ;;  %v298_v26 = vmul.f32 0.0, %v2616_v21 }
 0x124   :  { %v2110_v23 = vadd.f32 -1.0, %v296_v22 }
 0x126   :  { %300 = vrot.lane.b32.xlu0 %v2110_v23, %s2788_s26 }
 0x198   :  { %v301_v24 = vpop.permute.xlu0 %300 }
 0x199   :  { %v303_v25 = vmul.f32 %v2616_v21, %v301_v24  ;;  %v192_v24 = vadd.f32 %v2279_v57, %v2914_v12 }
 0x19b   :  { %305 = vrot.lane.b32.xlu0 %v303_v25, %s2789_s3 }
 0x20d   :  { %v306_v27 = vpop.permute.xlu0 %305 }
 0x20e   :  { %v308_v28 = vadd.f32 %v306_v27, %v298_v26 }
 0x210   :  { %2617 = vtanh.f32 %v308_v28 }
 0x21a   :  { %v2618_v29 = vpop.eup %2617 }
 0x21b   :  { %311 = vrot.lane.b32.xlu1 %v2618_v29, %s2788_s26 }
 0x28d   :  { %v312_v30 = vpop.permute.xlu1 %311 }
 0x28e   :  { %v314_v31 = vmul.f32 %v2616_v21, %v312_v30 }
 0x290   :  { %316 = vrot.lane.b32.xlu1 %v314_v31, %s2789_s3 }
 0x302   :  { %v317_v32 = vpop.permute.xlu1 %316 }
 0x303   :  { %319 = vst.msk [vmem:[#allocation2] sm:$0xff] %vm215_vm3, %v317_v32  ;;  %2306 = vmatmul.mubr.msk.f32.vlgmr.msra.gmra.mrb[2].mxu1 %vm215_vm3, %v317_v32 }
 0x304   :  { %2513 = vmatpush3.bf16.msra.mxu1 %v2877_v5  ;;  %2327 = vmatprep.mubr.msk.f32.mxu1 %vm2786_vm0, %v2787_v1 }
 0x305   :  { %2514 = vmatprep.subr.bf16.mxu1 %v2785_v0 }
 0x308   :  { %2516 = vmatpush3.bf16.msra.mxu1 %v2894_v10 }
 0x309   :  { %2523 = vmatprep.subr.bf16.mxu1 %v2785_v0 }
 0x3d6   :  { %v388_v34 = vpop.f32.mrb[2].mxu1 }
 0x3d7   :  { %v392_v35 = vadd.f32 %v388_v34, %v182_v33  ;;  %v2307_v36 = vpop.f32.mrb[3].mxu1 }
 0x3d9   :  { %v2112_v37 = vmul.f32 -1.442695, %v392_v35 }
 0x3db   :  { %2619 = vpow2.f32 %v2112_v37 }
 0x3e5   :  { %v2620_v38 = vpop.eup %2619 }
 0x3e6   :  { %v396_v39 = vadd.f32 1.0, %v2620_v38 }
 0x3e8   :  { %2621 = vrcp.f32 %v396_v39 }
 0x3f2   :  { %v2622_v40 = vpop.eup %2621 }
 0x3f3   :  { %v399_v41 = vmul.f32 2.0, %v2622_v40  ;;  %v401_v45 = vmul.f32 %v2622_v40, %v308_v28 }
 0x3f5   :  { %v2113_v42 = vadd.f32 -1.0, %v399_v41 }
 0x3f7   :  { %403 = vrot.lane.b32.xlu0 %v2113_v42, %s2788_s26 }
 0x469   :  { %v404_v43 = vpop.permute.xlu0 %403 }
 0x46a   :  { %v406_v44 = vmul.f32 %v2622_v40, %v404_v43  ;;  %v197_v43 = vadd.f32 %v2914_v12, %v2962_v60 }
 0x46c   :  { %408 = vrot.lane.b32.xlu1 %v406_v44, %s2789_s3 }
 0x4de   :  { %v409_v46 = vpop.permute.xlu1 %408 }
 0x4df   :  { %v411_v47 = vadd.f32 %v409_v46, %v401_v45 }
 0x4e1   :  { %2623 = vtanh.f32 %v411_v47 }
 0x4eb   :  { %v2624_v54 = vpop.eup %2623 }
 0x4ec   :  { %414 = vrot.lane.b32.xlu0 %v2624_v54, %s2788_s26 }
 0x55e   :  { %v415_v55 = vpop.permute.xlu0 %414 }
 0x55f   :  { %v417_v56 = vmul.f32 %v2622_v40, %v415_v55 }
 0x561   :  { %419 = vrot.lane.b32.xlu1 %v417_v56, %s2789_s3 }
 0x5d3   :  { %v420_v63 = vpop.permute.xlu1 %419 }
 0x5d4   :  { %422 = vst.msk [vmem:[#allocation2 + $0x8] sm:$0xff] %vm215_vm3, %v420_v63  ;;  %2317 = vmatmul.mubr.msk.f32.vlgmr.msra.gmra.mrb[8].mxu0 %vm215_vm3, %v420_v63 }
 0x5d5   :  { %2519 = vmatpush3.bf16.msra.mxu0 %v2877_v5  ;;  %2338 = vmatprep.mubr.msk.f32.mxu0 %vm2786_vm0, %v2787_v1 }
 0x5d6   :  { %2520 = vmatprep.subr.bf16.mxu0 %v2785_v0 }
 0x5d9   :  { %2522 = vmatpush3.bf16.msra.mxu0 %v2894_v10 }
 0x5da   :  { %2529 = vmatprep.subr.bf16.mxu0 %v2785_v0 }
 0x6a7   :  { %v491_v3 = vpop.f32.mrb[8].mxu0 }
 0x6a8   :  { %v495_v4 = vadd.f32 %v491_v3, %v187_v2  ;;  %v2318_v6 = vpop.f32.mrb[9].mxu0  ;;  %v202_v3 = vadd.f32 %v2960_v59, %v2914_v12 }
 0x6aa   :  { %v2115_v7 = vmul.f32 -1.442695, %v495_v4 }
 0x6ac   :  { %2625 = vpow2.f32 %v2115_v7 }
 0x6b6   :  { %v2626_v8 = vpop.eup %2625 }
 0x6b7   :  { %v499_v9 = vadd.f32 1.0, %v2626_v8 }
 0x6b9   :  { %2627 = vrcp.f32 %v499_v9 }
 0x6c3   :  { %v2628_v11 = vpop.eup %2627 }
 0x6c4   :  { %v502_v13 = vmul.f32 2.0, %v2628_v11  ;;  %v504_v17 = vmul.f32 %v2628_v11, %v411_v47 }
 0x6c6   :  { %v2116_v14 = vadd.f32 -1.0, %v502_v13 }
 0x6c8   :  { %506 = vrot.lane.b32.xlu0 %v2116_v14, %s2788_s26 }
 0x73a   :  { %v507_v15 = vpop.permute.xlu0 %506 }
 0x73b   :  { %v509_v16 = vmul.f32 %v2628_v11, %v507_v15 }
 0x73d   :  { %511 = vrot.lane.b32.xlu1 %v509_v16, %s2789_s3 }
 0x7af   :  { %v512_v18 = vpop.permute.xlu1 %511 }
 0x7b0   :  { %v514_v19 = vadd.f32 %v512_v18, %v504_v17  ;;  %v1041_v18 = vld [vmem:[%s3211_s4] sm:$0xff] }
 0x7b2   :  { %2629 = vtanh.f32 %v514_v19 }
 0x7bc   :  { %v2630_v20 = vpop.eup %2629 }
 0x7bd   :  { %517 = vrot.lane.b32.xlu0 %v2630_v20, %s2788_s26 }
 0x82f   :  { %v518_v21 = vpop.permute.xlu0 %517 }
 0x830   :  { %v520_v22 = vmul.f32 %v2628_v11, %v518_v21 }
 0x832   :  { %522 = vrot.lane.b32.xlu1 %v520_v22, %s2789_s3 }
 0x8a4   :  { %v523_v23 = vpop.permute.xlu1 %522 }
 0x8a5   :  { %525 = vst.msk [vmem:[#allocation2 + $0x10] sm:$0xff] %vm215_vm3, %v523_v23  ;;  %2328 = vmatmul.mubr.msk.f32.vlgmr.msra.gmra.mrb[4].mxu1 %vm215_vm3, %v523_v23 }
 0x8a6   :  { %2525 = vmatpush3.bf16.msra.mxu1 %v2877_v5  ;;  %2349 = vmatprep.mubr.msk.f32.mxu1 %vm2786_vm0, %v2787_v1 }
 0x8a7   :  { %2526 = vmatprep.subr.bf16.mxu1 %v2785_v0 }
 0x8aa   :  { %2528 = vmatpush3.bf16.msra.mxu1 %v2894_v10 }
 0x8ab   :  { %2535 = vmatprep.subr.bf16.mxu1 %v2785_v0 }
 0x978   :  { %v594_v25 = vpop.f32.mrb[4].mxu1 }
 0x979   :  { %v598_v26 = vadd.f32 %v594_v25, %v192_v24  ;;  %v2329_v27 = vpop.f32.mrb[5].mxu1  ;;  %v1043_v24 = vld [vmem:[%s3211_s4 + $0x10] sm:$0xff]  ;;  %v1044_v25 = vld [vmem:[%s3211_s4 + $0x18] sm:$0xff] }
 0x97b   :  { %v2118_v28 = vmul.f32 -1.442695, %v598_v26  ;;  %v2545_v26 = vpack.c.bf16 %v1044_v25, %v1043_v24 }
 0x97d   :  { %2631 = vpow2.f32 %v2118_v28  ;;  %v1050_v28 = vld [vmem:[#allocation2] sm:$0xff] }
 0x987   :  { %v2632_v29 = vpop.eup %2631 }
 0x988   :  { %v602_v30 = vadd.f32 1.0, %v2632_v29  ;;  %v1051_v29 = vld [vmem:[#allocation2 + $0x8] sm:$0xff] }
 0x98a   :  { %2633 = vrcp.f32 %v602_v30  ;;  %v1052_v30 = vld [vmem:[#allocation2 + $0x10] sm:$0xff] }
 0x994   :  { %v2634_v31 = vpop.eup %2633 }
 0x995   :  { %v605_v32 = vmul.f32 2.0, %v2634_v31  ;;  %v607_v36 = vmul.f32 %v2634_v31, %v514_v19  ;;  %v1042_v19 = vld [vmem:[%s3211_s4 + $0x8] sm:$0xff] }
 0x996   :  { %v2541_v20 = vpack.c.bf16 %v1042_v19, %v1041_v18 }
 0x997   :  { %v2119_v33 = vadd.f32 -1.0, %v605_v32 }
 0x999   :  { %609 = vrot.lane.b32.xlu0 %v2119_v33, %s2788_s26 }
 0xa0b   :  { %v610_v34 = vpop.permute.xlu0 %609 }
 0xa0c   :  { %v612_v35 = vmul.f32 %v2634_v31, %v610_v34  ;;  %v207_v34 = vadd.f32 %v2914_v12, %v2966_v62 }
 0xa0e   :  { %614 = vrot.lane.b32.xlu1 %v612_v35, %s2789_s3 }
 0xa80   :  { %v615_v37 = vpop.permute.xlu1 %614 }
 0xa81   :  { %v617_v38 = vadd.f32 %v615_v37, %v607_v36 }
 0xa83   :  { %2635 = vtanh.f32 %v617_v38 }
 0xa8d   :  { %v2636_v39 = vpop.eup %2635 }
 0xa8e   :  { %620 = vrot.lane.b32.xlu0 %v2636_v39, %s2788_s26 }
 0xb00   :  { %v621_v40 = vpop.permute.xlu0 %620 }
 0xb01   :  { %v623_v41 = vmul.f32 %v2634_v31, %v621_v40 }
 0xb03   :  { %625 = vrot.lane.b32.xlu1 %v623_v41, %s2789_s3 }
 0xb75   :  { %v626_v42 = vpop.permute.xlu1 %625 }
 0xb76   :  { %628 = vst.msk [vmem:[#allocation2 + $0x18] sm:$0xff] %vm215_vm3, %v626_v42  ;;  %2339 = vmatmul.mubr.msk.f32.vlgmr.msra.gmra.mrb[10].mxu0 %vm215_vm3, %v626_v42 }
 0xb77   :  { %2531 = vmatpush3.bf16.msra.mxu0 %v2877_v5  ;;  %2360 = vmatprep.mubr.msk.f32.mxu0 %vm2786_vm0, %v2787_v1 }
 0xb78   :  { %2532 = vmatprep.subr.bf16.mxu0 %v2785_v0 }
 0xb7b   :  { %2534 = vmatpush3.bf16.msra.mxu0 %v2894_v10 }
 0xb7c   :  { %2542 = vmatprep.subr.bf16.mxu0 %v2541_v20 }
 0xb7d   :  { %v1053_v31 = vld [vmem:[#allocation2 + $0x18] sm:$0xff] }
 0xc49   :  { %v697_v44 = vpop.f32.mrb[10].mxu0 }
 0xc4a   :  { %v701_v45 = vadd.f32 %v697_v44, %v197_v43  ;;  %v2340_v46 = vpop.f32.mrb[11].mxu0 }
 0xc4c   :  { %v2121_v47 = vmul.f32 -1.442695, %v701_v45 }
 0xc4e   :  { %2637 = vpow2.f32 %v2121_v47 }
 0xc58   :  { %v2638_v48 = vpop.eup %2637 }
 0xc59   :  { %v705_v49 = vadd.f32 1.0, %v2638_v48 }
 0xc5b   :  { %2639 = vrcp.f32 %v705_v49 }
 0xc65   :  { %v2640_v50 = vpop.eup %2639 }
 0xc66   :  { %v708_v51 = vmul.f32 2.0, %v2640_v50  ;;  %v710_v55 = vmul.f32 %v2640_v50, %v617_v38 }
 0xc68   :  { %v2122_v52 = vadd.f32 -1.0, %v708_v51 }
 0xc6a   :  { %712 = vrot.lane.b32.xlu0 %v2122_v52, %s2788_s26 }
 0xcdc   :  { %v713_v53 = vpop.permute.xlu0 %712 }
 0xcdd   :  { %v715_v54 = vmul.f32 %v2640_v50, %v713_v53 }
 0xcdf   :  { %717 = vrot.lane.b32.xlu1 %v715_v54, %s2789_s3 }
 0xd51   :  { %v718_v56 = vpop.permute.xlu1 %717 }
 0xd52   :  { %v720_v57 = vadd.f32 %v718_v56, %v710_v55  ;;  %v1045_v55 = vld [vmem:[#allocation3] sm:$0xff]  ;;  %v1046_v56 = vld [vmem:[#allocation3 + $0x8] sm:$0xff] }
 0xd54   :  { %2641 = vtanh.f32 %v720_v57 }
 0xd5e   :  { %v2642_v58 = vpop.eup %2641 }
 0xd5f   :  { %723 = vrot.lane.b32.xlu0 %v2642_v58, %s2788_s26  ;;  %v1047_v58 = vld [vmem:[#allocation3 + $0x10] sm:$0xff] }
 0xdd1   :  { %v724_v60 = vpop.permute.xlu0 %723 }
 0xdd2   :  { %v726_v63 = vmul.f32 %v2640_v50, %v724_v60  ;;  %v1048_v60 = vld [vmem:[#allocation3 + $0x18] sm:$0xff] }
 0xdd4   :  { %728 = vrot.lane.b32.xlu1 %v726_v63, %s2789_s3  ;;  %v3064_v63 = vpack.c.bf16 %v1048_v60, %v1047_v58 }
 0xe46   :  { %v729_v2 = vpop.permute.xlu1 %728 }
 0xe47   :  { %731 = vst.msk [vmem:[#allocation2 + $0x20] sm:$0xff] %vm215_vm3, %v729_v2  ;;  %2350 = vmatmul.mubr.msk.f32.vlgmr.msra.gmra.mrb[6].mxu1 %vm215_vm3, %v729_v2 }
 0xe48   :  { %2537 = vmatpush3.bf16.msra.mxu1 %v2877_v5  ;;  %2371 = vmatprep.mubr.msk.f32.mxu1 %vm2786_vm0, %v2787_v1 }
 0xe49   :  { %2538 = vmatprep.subr.bf16.mxu1 %v2785_v0 }
 0xe4c   :  { %2540 = vmatpush3.bf16.msra.mxu1 %v2894_v10 }
 0xe4d   :  { %2549 = vmatprep.subr.bf16.mxu1 %v2785_v0 }
 0xe4e   :  { %v1054_v32 = vld [vmem:[#allocation2 + $0x20] sm:$0xff] }
 0xf1a   :  { %v800_v4 = vpop.f32.mrb[6].mxu1 }
 0xf1b   :  { %v804_v6 = vadd.f32 %v800_v4, %v202_v3  ;;  %v2351_v7 = vpop.f32.mrb[7].mxu1 }
 0xf1c   :  { %v212_v7 = vadd.f32 %v2964_v61, %v2914_v12 }
 0xf1d   :  { %v2124_v8 = vmul.f32 -1.442695, %v804_v6 }
 0xf1f   :  { %2643 = vpow2.f32 %v2124_v8 }
 0xf29   :  { %v2644_v9 = vpop.eup %2643 }
 0xf2a   :  { %v808_v11 = vadd.f32 1.0, %v2644_v9 }
 0xf2c   :  { %2645 = vrcp.f32 %v808_v11 }
 0xf36   :  { %v2646_v5 = vpop.eup %2645 }
 0xf37   :  { %v811_v13 = vmul.f32 2.0, %v2646_v5  ;;  %v813_v16 = vmul.f32 %v2646_v5, %v720_v57  ;;  %v3060_v57 = vpack.c.bf16 %v1046_v56, %v1045_v55 }
 0xf39   :  { %v2125_v14 = vadd.f32 -1.0, %v811_v13 }
 0xf3b   :  { %815 = vrot.lane.b32.xlu0 %v2125_v14, %s2788_s26 }
 0xfad   :  { %v816_v15 = vpop.permute.xlu0 %815 }
 0xfae   :  { %v818_v10 = vmul.f32 %v2646_v5, %v816_v15 }
 0xfb0   :  { %820 = vrot.lane.b32.xlu1 %v818_v10, %s2789_s3 }
0x1022   :  { %v821_v17 = vpop.permute.xlu1 %820 }
0x1023   :  { %v823_v59 = vadd.f32 %v821_v17, %v813_v16 }
0x1025   :  { %2647 = vtanh.f32 %v823_v59 }
0x102f   :  { %v2648_v21 = vpop.eup %2647 }
0x1030   :  { %826 = vrot.lane.b32.xlu0 %v2648_v21, %s2788_s26 }
0x10a2   :  { %v827_v22 = vpop.permute.xlu0 %826 }
0x10a3   :  { %v829_v23 = vmul.f32 %v2646_v5, %v827_v22  ;;  %v3090_v5 = vld [vmem:[%s3213_s6] ss:$0 sm:$0xff] }
0x10a5   :  { %831 = vrot.lane.b32.xlu1 %v829_v23, %s2789_s3 }
0x1117   :  { %v832_v27 = vpop.permute.xlu1 %831 }
0x1118   :  { %834 = vst.msk [vmem:[#allocation2 + $0x28] sm:$0xff] %vm215_vm3, %v832_v27  ;;  %2361 = vmatmul.mubr.msk.f32.vlgmr.msra.gmra.mrb[12].mxu0 %vm215_vm3, %v832_v27 }
0x1119   :  { %2544 = vmatpush3.bf16.msra.mxu0 %v2541_v20  ;;  %2382 = vmatprep.mubr.msk.f32.mxu0 %vm215_vm3, %v1050_v28 }
0x111a   :  { %2546 = vmatprep.subr.bf16.mxu0 %v2545_v26 }
0x111d   :  { %2548 = vmatpush3.bf16.msra.mxu0 %v2545_v26 }
0x111e   :  { %2561 = vmatprep.subr.bf16.mxu0 %v2785_v0 }
0x111f   :  { %v1055_v33 = vld [vmem:[#allocation2 + $0x28] sm:$0xff] }
0x1120   :  { %2383 = vmatmul.mubr.msk.f32.vlgmr.msra.gmra.mrb[14].mxu0 %vm215_vm3, %v1051_v29 }
0x1121   :  { %2385 = vmatprep.mubr.msk.f32.mxu0 %vm215_vm3, %v1052_v30  ;;  %2563 = vmatpush3.bf16.msra.mxu0 %v3060_v57 }
0x1122   :  { %2564 = vmatprep.subr.bf16.mxu0 %v2785_v0 }
0x1124   :  { %2386 = vmatmul.mubr.msk.f32.gmra.mrb[16].mxu0 %vm215_vm3, %v1053_v31 }
0x1125   :  { %2388 = vmatprep.mubr.msk.f32.mxu0 %vm215_vm3, %v1054_v32  ;;  %2566 = vmatpush3.bf16.msra.mxu0 %v3064_v63 }
0x1126   :  { %2573 = vmatprep.subr.bf16.mxu0 %v2785_v0 }
0x1128   :  { %2389 = vmatmul.mubr.msk.f32.gmra.mrb[18].mxu0 %vm215_vm3, %v1055_v33 }
0x11eb   :  { %v903_v35 = vpop.f32.mrb[12].mxu0 }
0x11ec   :  { %v907_v36 = vadd.f32 %v903_v35, %v207_v34  ;;  %v2362_v37 = vpop.f32.mrb[13].mxu0 }
0x11ee   :  { %v2127_v38 = vmul.f32 -1.442695, %v907_v36 }
0x11f0   :  { %2649 = vpow2.f32 %v2127_v38 }
0x11f3   :  { %v3044_v39 = vpop.f32.mrb[14].mxu0 }
0x11f4   :  { %v1154_v40 = vpop.f32.mrb[15].mxu0 }
0x11f5   :  { %v1155_v13 = vadd.f32 %v3090_v5, %v1154_v40 }
0x11f7   :  { %v3046_v41 = vpop.f32.mrb[16].mxu0 }
0x11f8   :  { %v3048_v42 = vpop.f32.mrb[17].mxu0 }
0x11fa   :  { %v2650_v43 = vpop.eup %2649 }
0x11fb   :  { %v911_v44 = vadd.f32 1.0, %v2650_v43  ;;  %v3050_v45 = vpop.f32.mrb[18].mxu0 }
0x11fc   :  { %v3052_v46 = vpop.f32.mrb[19].mxu0 }
0x11fd   :  { %2651 = vrcp.f32 %v911_v44 }
0x1207   :  { %v2652_v62 = vpop.eup %2651 }
0x1208   :  { %v914_v47 = vmul.f32 2.0, %v2652_v62  ;;  %v916_v51 = vmul.f32 %v2652_v62, %v823_v59 }
0x120a   :  { %v2128_v48 = vadd.f32 -1.0, %v914_v47 }
0x120c   :  { %918 = vrot.lane.b32.xlu0 %v2128_v48, %s2788_s26 }
0x127e   :  { %v919_v49 = vpop.permute.xlu0 %918 }
0x127f   :  { %v921_v50 = vmul.f32 %v2652_v62, %v919_v49 }
0x1281   :  { %923 = vrot.lane.b32.xlu1 %v921_v50, %s2789_s3 }
0x12f3   :  { %v924_v52 = vpop.permute.xlu1 %923 }
0x12f4   :  { %v3056_v53 = vadd.f32 %v924_v52, %v916_v51 }
0x12f6   :  { %2653 = vtanh.f32 %v3056_v53 }
0x1300   :  { %v2654_v54 = vpop.eup %2653 }
0x1301   :  { %929 = vrot.lane.b32.xlu0 %v2654_v54, %s2788_s26 }
0x1373   :  { %v930_v2 = vpop.permute.xlu0 %929 }
0x1374   :  { %v932_v3 = vmul.f32 %v2652_v62, %v930_v2  ;;  %v1160_v62 = vadd.f32 %v3044_v39, %v3090_v5 }
0x1376   :  { %934 = vrot.lane.b32.xlu1 %v932_v3, %s2789_s3 }
0x13e8   :  { %v935_v4 = vpop.permute.xlu1 %934 }
0x13e9   :  { %937 = vst.msk [vmem:[#allocation2 + $0x30] sm:$0xff] %vm215_vm3, %v935_v4  ;;  %2372 = vmatmul.mubr.msk.f32.vlgmr.msra.gmra.mrb[8].mxu1 %vm215_vm3, %v935_v4 }
0x13ea   :  { %2551 = vmatpush3.bf16.msra.mxu1 %v3060_v57  ;;  %2402 = vmatprep.mubr.msk.f32.mxu1 %vm2786_vm0, %v2787_v1 }
0x13eb   :  { %2552 = vmatprep.subr.bf16.mxu1 %v2785_v0 }
0x13ee   :  { %2554 = vmatpush3.bf16.msra.mxu1 %v3064_v63 }
0x13ef   :  { %2555 = vmatprep.subr.bf16.mxu1 %v2785_v0 }
0x13f0   :  { %v1056_v6 = vld [vmem:[#allocation2 + $0x30] sm:$0xff] }
0x13f1   :  { %2403 = vmatmul.mubr.f32.vlgmr.msra.gmra.mrb[10].mxu1 %v2787_v1  ;;  %2391 = vmatprep.mubr.msk.f32.mxu0 %vm215_vm3, %v1056_v6 }
0x13f2   :  { %2557 = vmatpush3.bf16.msra.mxu1 %v3060_v57  ;;  %2413 = vmatprep.mubr.msk.f32.mxu1 %vm2786_vm0, %v2787_v1 }
0x13f3   :  { %2558 = vmatprep.subr.bf16.mxu1 %v2785_v0 }
0x13f6   :  { %2560 = vmatpush3.bf16.msra.mxu1 %v3064_v63 }
0x13f7   :  { %2567 = vmatprep.subr.bf16.mxu1 %v2785_v0 }
0x14bc   :  { %v1006_v8 = vpop.f32.mrb[8].mxu1 }
0x14bd   :  { %v1010_v9 = vadd.f32 %v1006_v8, %v212_v7  ;;  %v2373_v11 = vpop.f32.mrb[9].mxu1 }
0x14bf   :  { %v2130_v21 = vmul.f32 -1.442695, %v1010_v9 }
0x14c4   :  { %v1259_v14 = vpop.f32.mrb[10].mxu1 }
0x14c5   :  { %v1263_v15 = vadd.f32 %v1259_v14, %v1155_v13  ;;  %v2404_v10 = vpop.f32.mrb[11].mxu1  ;;  %v1165_v14 = vadd.f32 %v3090_v5, %v3048_v42 }
0x14c7   :  { %v2141_v16 = vmul.f32 -1.442695, %v1263_v15 }
0x14c9   :  { %2655 = vpow2.f32 %v2141_v16 }
0x14d3   :  { %v2656_v17 = vpop.eup %2655 }
0x14d4   :  { %v1267_v59 = vadd.f32 1.0, %v2656_v17 }
0x14d6   :  { %2657 = vrcp.f32 %v1267_v59 }
0x14d7   :  { %2659 = vpow2.f32 %v2130_v21 }
0x14e0   :  { %v2658_v18 = vpop.eup %2657 }
0x14e1   :  { %v1270_v12 = vmul.f32 2.0, %v2658_v18  ;;  %v2660_v22 = vpop.eup %2659  ;;  %v1272_v24 = vmul.f32 0.0, %v2658_v18 }
0x14e2   :  { %v1014_v23 = vadd.f32 1.0, %v2660_v22 }
0x14e3   :  { %v2142_v61 = vadd.f32 -1.0, %v1270_v12 }
0x14e4   :  { %2661 = vrcp.f32 %v1014_v23 }
0x14e5   :  { %1274 = vrot.lane.b32.xlu0 %v2142_v61, %s2788_s26 }
0x14ee   :  { %v2662_v27 = vpop.eup %2661 }
0x14ef   :  { %v1017_v28 = vmul.f32 2.0, %v2662_v27  ;;  %v1019_v36 = vmul.f32 %v2662_v27, %v3056_v53 }
0x14f1   :  { %v2131_v30 = vadd.f32 -1.0, %v1017_v28  ;;  %v1170_v28 = vadd.f32 %v3046_v41, %v3090_v5 }
0x1557   :  { %v1275_v19 = vpop.permute.xlu0 %1274 }
0x1558   :  { %v1277_v20 = vmul.f32 %v2658_v18, %v1275_v19 }
0x155a   :  { %1279 = vrot.lane.b32.xlu1 %v1277_v20, %s2789_s3 }
0x15cc   :  { %v1280_v25 = vpop.permute.xlu1 %1279 }
0x15cd   :  { %v1282_v26 = vadd.f32 %v1280_v25, %v1272_v24 }
0x15cf   :  { %2663 = vtanh.f32 %v1282_v26 }
0x15d9   :  { %v2664_v29 = vpop.eup %2663 }
0x15da   :  { %1285 = vrot.lane.b32.xlu0 %v2664_v29, %s2788_s26 }
0x15de   :  { %1021 = vrot.lane.b32.xlu0 %v2131_v30, %s2788_s26 }
0x164c   :  { %v1286_v31 = vpop.permute.xlu0 %1285 }
0x164d   :  { %v1288_v32 = vmul.f32 %v2658_v18, %v1286_v31 }
0x164f   :  { %1290 = vrot.lane.b32.xlu1 %v1288_v32, %s2789_s3 }
0x1650   :  { %v1022_v33 = vpop.permute.xlu0 %1021 }
0x1651   :  { %v1024_v34 = vmul.f32 %v2662_v27, %v1022_v33 }
0x1653   :  { %1026 = vrot.lane.b32.xlu0 %v1024_v34, %s2789_s3 }
0x16c1   :  { %v1291_v35 = vpop.permute.xlu1 %1290 }
0x16c2   :  { %2414 = vmatmul.mubr.msk.f32.vlgmr.msra.gmra.mrb[12].mxu1 %vm215_vm3, %v1291_v35 }
0x16c3   :  { %2569 = vmatpush3.bf16.msra.mxu1 %v3060_v57  ;;  %2435 = vmatprep.mubr.msk.f32.mxu1 %vm2786_vm0, %v2787_v1 }
0x16c4   :  { %2570 = vmatprep.subr.bf16.mxu1 %v2785_v0 }
0x16c5   :  { %v1027_v37 = vpop.permute.xlu0 %1026 }
0x16c6   :  { %v1029_v38 = vadd.f32 %v1027_v37, %v1019_v36 }
0x16c7   :  { %2572 = vmatpush3.bf16.msra.mxu1 %v3064_v63 }
0x16c8   :  { %2665 = vtanh.f32 %v1029_v38  ;;  %2579 = vmatprep.subr.bf16.mxu1 %v2785_v0 }
0x16d2   :  { %v2666_v40 = vpop.eup %2665 }
0x16d3   :  { %1032 = vrot.lane.b32.xlu0 %v2666_v40, %s2788_s26 }
0x1745   :  { %v1033_v43 = vpop.permute.xlu0 %1032 }
0x1746   :  { %v1035_v44 = vmul.f32 %v2662_v27, %v1033_v43 }
0x1748   :  { %1037 = vrot.lane.b32.xlu0 %v1035_v44, %s2789_s3 }
0x1795   :  { %v1360_v47 = vpop.f32.mrb[12].mxu1 }
0x1796   :  { %v1364_v48 = vadd.f32 %v1360_v47, %v1160_v62  ;;  %v2415_v49 = vpop.f32.mrb[13].mxu1 }
0x1798   :  { %v2144_v50 = vmul.f32 -1.442695, %v1364_v48 }
0x179a   :  { %2667 = vpow2.f32 %v2144_v50  ;;  %v1175_v50 = vadd.f32 %v3090_v5, %v3052_v46 }
0x17a4   :  { %v2668_v51 = vpop.eup %2667 }
0x17a5   :  { %v1368_v52 = vadd.f32 1.0, %v2668_v51 }
0x17a7   :  { %2669 = vrcp.f32 %v1368_v52 }
0x17b1   :  { %v2670_v53 = vpop.eup %2669 }
0x17b2   :  { %v1371_v54 = vmul.f32 2.0, %v2670_v53  ;;  %v1373_v4 = vmul.f32 %v2670_v53, %v1282_v26 }
0x17b4   :  { %v2145_v55 = vadd.f32 -1.0, %v1371_v54 }
0x17b6   :  { %1375 = vrot.lane.b32.xlu1 %v2145_v55, %s2788_s26 }
0x17ba   :  { %v1038_v56 = vpop.permute.xlu0 %1037 }
0x17bb   :  { %1040 = vst.msk [vmem:[#allocation2 + $0x38] sm:$0xff] %vm215_vm3, %v1038_v56 }
0x17c2   :  { %v1057_v58 = vld [vmem:[#allocation2 + $0x38] sm:$0xff] }
0x17c3   :  { %2392 = vmatmul.mubr.msk.f32.gmra.mrb[20].mxu0 %vm215_vm3, %v1057_v58 }
0x17c4   :  { %2424 = vmatprep.mubr.msk.f32.mxu0 %vm2786_vm0, %v2787_v1 }
0x1828   :  { %v1376_v39 = vpop.permute.xlu1 %1375 }
0x1829   :  { %v1378_v60 = vmul.f32 %v2670_v53, %v1376_v39 }
0x182b   :  { %1380 = vrot.lane.b32.xlu1 %v1378_v60, %s2789_s3 }
0x1896   :  { %v3117_v2 = vpop.f32.mrb[20].mxu0 }
0x1897   :  { %v3119_v3 = vpop.f32.mrb[21].mxu0 }
0x189d   :  { %v1381_v6 = vpop.permute.xlu1 %1380 }
0x189e   :  { %v1383_v7 = vadd.f32 %v1381_v6, %v1373_v4 }
0x18a0   :  { %2671 = vtanh.f32 %v1383_v7 }
0x18aa   :  { %v2672_v8 = vpop.eup %2671 }
0x18ab   :  { %1386 = vrot.lane.b32.xlu1 %v2672_v8, %s2788_s26 }
0x191d   :  { %v1387_v9 = vpop.permute.xlu1 %1386 }
0x191e   :  { %v1389_v11 = vmul.f32 %v2670_v53, %v1387_v9 }
0x1920   :  { %1391 = vrot.lane.b32.xlu1 %v1389_v11, %s2789_s3 }
0x1992   :  { %v1392_v13 = vpop.permute.xlu1 %1391 }
0x1993   :  { %2425 = vmatmul.mubr.msk.f32.vlgmr.msra.gmra.mrb[22].mxu0 %vm215_vm3, %v1392_v13 }
0x1994   :  { %2575 = vmatpush3.bf16.msra.mxu0 %v3060_v57  ;;  %2446 = vmatprep.mubr.msk.f32.mxu0 %vm2786_vm0, %v2787_v1 }
0x1995   :  { %2576 = vmatprep.subr.bf16.mxu0 %v2785_v0 }
0x1998   :  { %2578 = vmatpush3.bf16.msra.mxu0 %v3064_v63 }
0x1999   :  { %2585 = vmatprep.subr.bf16.mxu0 %v2785_v0 }
0x1a66   :  { %v1461_v15 = vpop.f32.mrb[22].mxu0 }
0x1a67   :  { %v1465_v10 = vadd.f32 %v1461_v15, %v1165_v14  ;;  %v2426_v16 = vpop.f32.mrb[23].mxu0  ;;  %v1180_v15 = vadd.f32 %v3050_v45, %v3090_v5 }
0x1a69   :  { %v2147_v17 = vmul.f32 -1.442695, %v1465_v10 }
0x1a6b   :  { %2673 = vpow2.f32 %v2147_v17 }
0x1a75   :  { %v2674_v59 = vpop.eup %2673 }
0x1a76   :  { %v1469_v18 = vadd.f32 1.0, %v2674_v59 }
0x1a78   :  { %2675 = vrcp.f32 %v1469_v18 }
0x1a82   :  { %v2676_v12 = vpop.eup %2675 }
0x1a83   :  { %v1472_v61 = vmul.f32 2.0, %v2676_v12  ;;  %v1474_v22 = vmul.f32 %v2676_v12, %v1383_v7 }
0x1a85   :  { %v2148_v19 = vadd.f32 -1.0, %v1472_v61 }
0x1a87   :  { %1476 = vrot.lane.b32.xlu0 %v2148_v19, %s2788_s26 }
0x1af9   :  { %v1477_v20 = vpop.permute.xlu0 %1476 }
0x1afa   :  { %v1479_v21 = vmul.f32 %v2676_v12, %v1477_v20 }
0x1afc   :  { %1481 = vrot.lane.b32.xlu1 %v1479_v21, %s2789_s3 }
0x1b6e   :  { %v1482_v23 = vpop.permute.xlu1 %1481 }
0x1b6f   :  { %v1484_v42 = vadd.f32 %v1482_v23, %v1474_v22 }
0x1b71   :  { %2677 = vtanh.f32 %v1484_v42 }
0x1b7b   :  { %v2678_v24 = vpop.eup %2677 }
0x1b7c   :  { %1487 = vrot.lane.b32.xlu0 %v2678_v24, %s2788_s26 }
0x1bee   :  { %v1488_v25 = vpop.permute.xlu0 %1487 }
0x1bef   :  { %v1490_v26 = vmul.f32 %v2676_v12, %v1488_v25 }
0x1bf1   :  { %1492 = vrot.lane.b32.xlu1 %v1490_v26, %s2789_s3  ;;  %v1185_v26 = vadd.f32 %v3090_v5, %v3119_v3 }
0x1c63   :  { %v1493_v27 = vpop.permute.xlu1 %1492 }
0x1c64   :  { %2436 = vmatmul.mubr.msk.f32.vlgmr.msra.gmra.mrb[14].mxu1 %vm215_vm3, %v1493_v27 }
0x1c65   :  { %2581 = vmatpush3.bf16.msra.mxu1 %v3060_v57  ;;  %2457 = vmatprep.mubr.msk.f32.mxu1 %vm2786_vm0, %v2787_v1 }
0x1c66   :  { %2582 = vmatprep.subr.bf16.mxu1 %v2785_v0 }
0x1c69   :  { %2584 = vmatpush3.bf16.msra.mxu1 %v3064_v63 }
0x1c6a   :  { %2591 = vmatprep.subr.bf16.mxu1 %v2785_v0 }
0x1d37   :  { %v1562_v29 = vpop.f32.mrb[14].mxu1 }
0x1d38   :  { %v1566_v30 = vadd.f32 %v1562_v29, %v1170_v28  ;;  %v2437_v31 = vpop.f32.mrb[15].mxu1 }
0x1d3a   :  { %v2150_v32 = vmul.f32 -1.442695, %v1566_v30 }
0x1d3c   :  { %2679 = vpow2.f32 %v2150_v32 }
0x1d46   :  { %v2680_v33 = vpop.eup %2679 }
0x1d47   :  { %v1570_v34 = vadd.f32 1.0, %v2680_v33 }
0x1d49   :  { %2681 = vrcp.f32 %v1570_v34 }
0x1d53   :  { %v2682_v35 = vpop.eup %2681 }
0x1d54   :  { %v1573_v36 = vmul.f32 2.0, %v2682_v35  ;;  %v1575_v43 = vmul.f32 %v2682_v35, %v1484_v42 }
0x1d56   :  { %v2151_v37 = vadd.f32 -1.0, %v1573_v36 }
0x1d58   :  { %1577 = vrot.lane.b32.xlu0 %v2151_v37, %s2788_s26 }
0x1dca   :  { %v1578_v38 = vpop.permute.xlu0 %1577 }
0x1dcb   :  { %v1580_v40 = vmul.f32 %v2682_v35, %v1578_v38 }
0x1dcd   :  { %1582 = vrot.lane.b32.xlu1 %v1580_v40, %s2789_s3 }
0x1e3f   :  { %v1583_v44 = vpop.permute.xlu1 %1582 }
0x1e40   :  { %v1585_v41 = vadd.f32 %v1583_v44, %v1575_v43 }
0x1e42   :  { %2683 = vtanh.f32 %v1585_v41 }
0x1e4c   :  { %v2684_v62 = vpop.eup %2683 }
0x1e4d   :  { %1588 = vrot.lane.b32.xlu0 %v2684_v62, %s2788_s26  ;;  %v1190_v62 = vadd.f32 %v3117_v2, %v3090_v5  ;;  %v1996_v2 = vld [vmem:[#allocation6] sm:$0xff] }
0x1ebf   :  { %v1589_v47 = vpop.permute.xlu0 %1588 }
0x1ec0   :  { %v1591_v48 = vmul.f32 %v2682_v35, %v1589_v47 }
0x1ec2   :  { %1593 = vrot.lane.b32.xlu1 %v1591_v48, %s2789_s3 }
0x1f34   :  { %v1594_v49 = vpop.permute.xlu1 %1593 }
0x1f35   :  { %2447 = vmatmul.mubr.msk.f32.vlgmr.msra.gmra.mrb[24].mxu0 %vm215_vm3, %v1594_v49 }
0x1f36   :  { %2587 = vmatpush3.bf16.msra.mxu0 %v3060_v57  ;;  %2468 = vmatprep.mubr.msk.f32.mxu0 %vm2786_vm0, %v2787_v1 }
0x1f37   :  { %2588 = vmatprep.subr.bf16.mxu0 %v2785_v0 }
0x1f3a   :  { %2590 = vmatpush3.bf16.msra.mxu0 %v3064_v63 }
0x1f3b   :  { %2597 = vmatprep.subr.bf16.mxu0 %v2785_v0 }
0x2008   :  { %v1663_v51 = vpop.f32.mrb[24].mxu0 }
0x2009   :  { %v1667_v52 = vadd.f32 %v1663_v51, %v1175_v50  ;;  %v2448_v53 = vpop.f32.mrb[25].mxu0 }
0x200b   :  { %v2153_v54 = vmul.f32 -1.442695, %v1667_v52 }
0x200d   :  { %2685 = vpow2.f32 %v2153_v54 }
0x2017   :  { %v2686_v55 = vpop.eup %2685 }
0x2018   :  { %v1671_v56 = vadd.f32 1.0, %v2686_v55 }
0x201a   :  { %2687 = vrcp.f32 %v1671_v56 }
0x2024   :  { %v2688_v58 = vpop.eup %2687 }
0x2025   :  { %v1674_v39 = vmul.f32 2.0, %v2688_v58  ;;  %v1676_v7 = vmul.f32 %v2688_v58, %v1585_v41 }
0x2027   :  { %v2154_v60 = vadd.f32 -1.0, %v1674_v39 }
0x2029   :  { %1678 = vrot.lane.b32.xlu0 %v2154_v60, %s2788_s26 }
0x209b   :  { %v1679_v4 = vpop.permute.xlu0 %1678 }
0x209c   :  { %v1681_v6 = vmul.f32 %v2688_v58, %v1679_v4  ;;  %v1997_v4 = vld [vmem:[#allocation6 + $0x8] sm:$0xff] }
0x209e   :  { %1683 = vrot.lane.b32.xlu1 %v1681_v6, %s2789_s3  ;;  %v1998_v6 = vld [vmem:[#allocation6 + $0x10] sm:$0xff] }
0x2110   :  { %v1684_v8 = vpop.permute.xlu1 %1683 }
0x2111   :  { %v1686_v46 = vadd.f32 %v1684_v8, %v1676_v7  ;;  %v2598_v7 = vpack.c.bf16 %v1997_v4, %v1996_v2  ;;  %v1999_v8 = vld [vmem:[#allocation6 + $0x18] sm:$0xff] }
0x2113   :  { %2689 = vtanh.f32 %v1686_v46 }
0x211d   :  { %v2690_v9 = vpop.eup %2689 }
0x211e   :  { %1689 = vrot.lane.b32.xlu0 %v2690_v9, %s2788_s26 }
0x2190   :  { %v1690_v11 = vpop.permute.xlu0 %1689 }
0x2191   :  { %v1692_v13 = vmul.f32 %v2688_v58, %v1690_v11 }
0x2193   :  { %1694 = vrot.lane.b32.xlu1 %v1692_v13, %s2789_s3 }
0x2205   :  { %v1695_v14 = vpop.permute.xlu1 %1694 }
0x2206   :  { %2458 = vmatmul.mubr.msk.f32.vlgmr.msra.gmra.mrb[16].mxu1 %vm215_vm3, %v1695_v14 }
0x2207   :  { %2593 = vmatpush3.bf16.msra.mxu1 %v3060_v57  ;;  %2479 = vmatprep.mubr.msk.f32.mxu1 %vm2786_vm0, %v2787_v1 }
0x2208   :  { %2594 = vmatprep.subr.bf16.mxu1 %v2785_v0 }
0x220b   :  { %2596 = vmatpush3.bf16.msra.mxu1 %v3064_v63 }
0x22d9   :  { %v1764_v10 = vpop.f32.mrb[16].mxu1 }
0x22da   :  { %v1768_v16 = vadd.f32 %v1764_v10, %v1180_v15  ;;  %v2459_v17 = vpop.f32.mrb[17].mxu1  ;;  %v2164_v15 = vld [vmem:[%s3215_s8] ss:$0 sm:$0xff] }
0x22dc   :  { %v2156_v59 = vmul.f32 -1.442695, %v1768_v16 }
0x22de   :  { %2691 = vpow2.f32 %v2156_v59 }
0x22e8   :  { %v2692_v18 = vpop.eup %2691 }
0x22e9   :  { %v1772_v12 = vadd.f32 1.0, %v2692_v18 }
0x22eb   :  { %2693 = vrcp.f32 %v1772_v12 }
0x22f5   :  { %v2694_v61 = vpop.eup %2693 }
0x22f6   :  { %v1775_v57 = vmul.f32 2.0, %v2694_v61  ;;  %v1777_v63 = vmul.f32 %v2694_v61, %v1686_v46  ;;  %v2601_v46 = vpack.c.bf16 %v1999_v8, %v1998_v6 }
0x22f8   :  { %v2157_v19 = vadd.f32 -1.0, %v1775_v57 }
0x22fa   :  { %1779 = vrot.lane.b32.xlu0 %v2157_v19, %s2788_s26 }
0x236c   :  { %v1780_v20 = vpop.permute.xlu0 %1779 }
0x236d   :  { %v1782_v21 = vmul.f32 %v2694_v61, %v1780_v20 }
0x236f   :  { %1784 = vrot.lane.b32.xlu1 %v1782_v21, %s2789_s3 }
0x23e1   :  { %v1785_v22 = vpop.permute.xlu1 %1784 }
0x23e2   :  { %v1787_v45 = vadd.f32 %v1785_v22, %v1777_v63 }
0x23e4   :  { %2695 = vtanh.f32 %v1787_v45 }
0x23ee   :  { %v2696_v23 = vpop.eup %2695 }
0x23ef   :  { %1790 = vrot.lane.b32.xlu0 %v2696_v23, %s2788_s26 }
0x2461   :  { %v1791_v42 = vpop.permute.xlu0 %1790 }
0x2462   :  { %v1793_v24 = vmul.f32 %v2694_v61, %v1791_v42 }
0x2464   :  { %1795 = vrot.lane.b32.xlu1 %v1793_v24, %s2789_s3 }
0x24d6   :  { %v1796_v25 = vpop.permute.xlu1 %1795 }
0x24d7   :  { %2469 = vmatmul.mubr.msk.f32.vlgmr.msra.gmra.mrb[26].mxu0 %vm215_vm3, %v1796_v25 }
0x24d8   :  { %2490 = vmatprep.mubr.msk.f32.mxu0 %vm2786_vm0, %v2787_v1  ;;  %2599 = vmatpush3.bf16.msra.mxu0 %v2598_v7 }
0x24d9   :  { %2600 = vmatprep.subr.bf16.mxu0 %v2785_v0 }
0x24dc   :  { %2602 = vmatpush3.bf16.msra.mxu0 %v2601_v46 }
0x25aa   :  { %v1865_v27 = vpop.f32.mrb[26].mxu0 }
0x25ab   :  { %v1869_v28 = vadd.f32 %v1865_v27, %v1185_v26  ;;  %v2470_v29 = vpop.f32.mrb[27].mxu0 }
0x25ad   :  { %v2159_v30 = vmul.f32 -1.442695, %v1869_v28 }
0x25af   :  { %2697 = vpow2.f32 %v2159_v30 }
0x25b9   :  { %v2698_v31 = vpop.eup %2697 }
0x25ba   :  { %v1873_v32 = vadd.f32 1.0, %v2698_v31 }
0x25bc   :  { %2699 = vrcp.f32 %v1873_v32 }
0x25c6   :  { %v2700_v33 = vpop.eup %2699 }
0x25c7   :  { %v1876_v34 = vmul.f32 2.0, %v2700_v33  ;;  %v1878_v1 = vmul.f32 %v2700_v33, %v1787_v45 }
0x25c9   :  { %v2160_v35 = vadd.f32 -1.0, %v1876_v34 }
0x25cb   :  { %1880 = vrot.lane.b32.xlu0 %v2160_v35, %s2788_s26 }
0x263d   :  { %v1881_v36 = vpop.permute.xlu0 %1880 }
0x263e   :  { %v1883_v37 = vmul.f32 %v2700_v33, %v1881_v36 }
0x2640   :  { %1885 = vrot.lane.b32.xlu1 %v1883_v37, %s2789_s3 }
0x26b2   :  { %v1886_v38 = vpop.permute.xlu1 %1885 }
0x26b3   :  { %v1888_v3 = vadd.f32 %v1886_v38, %v1878_v1 }
0x26b5   :  { %2701 = vtanh.f32 %v1888_v3 }
0x26bf   :  { %v2702_v40 = vpop.eup %2701 }
0x26c0   :  { %1891 = vrot.lane.b32.xlu0 %v2702_v40, %s2788_s26 }
0x2732   :  { %v1892_v43 = vpop.permute.xlu0 %1891 }
0x2733   :  { %v1894_v44 = vmul.f32 %v2700_v33, %v1892_v43 }
0x2735   :  { %1896 = vrot.lane.b32.xlu1 %v1894_v44, %s2789_s3 }
0x27a7   :  { %v1897_v41 = vpop.permute.xlu1 %1896 }
0x27a8   :  { %2480 = vmatmul.mubr.msk.f32.vlgmr.msra.gmra.mrb[18].mxu1 %vm215_vm3, %v1897_v41 }
0x287b   :  { %v1966_v47 = vpop.f32.mrb[18].mxu1 }
0x287c   :  { %v1970_v48 = vadd.f32 %v1966_v47, %v1190_v62  ;;  %v2481_v49 = vpop.f32.mrb[19].mxu1 }
0x287e   :  { %v2162_v50 = vmul.f32 -1.442695, %v1970_v48 }
0x2880   :  { %2703 = vpow2.f32 %v2162_v50 }
0x288a   :  { %v2704_v51 = vpop.eup %2703 }
0x288b   :  { %v1974_v52 = vadd.f32 1.0, %v2704_v51 }
0x288d   :  { %2705 = vrcp.f32 %v1974_v52 }
0x2897   :  { %v2706_v53 = vpop.eup %2705 }
0x2898   :  { %v1977_v54 = vmul.f32 2.0, %v2706_v53  ;;  %v1979_v39 = vmul.f32 %v2706_v53, %v1888_v3 }
0x289a   :  { %v2163_v55 = vadd.f32 -1.0, %v1977_v54 }
0x289c   :  { %1981 = vrot.lane.b32.xlu0 %v2163_v55, %s2788_s26 }
0x290e   :  { %v1982_v56 = vpop.permute.xlu0 %1981 }
0x290f   :  { %v1984_v58 = vmul.f32 %v2706_v53, %v1982_v56 }
0x2911   :  { %1986 = vrot.lane.b32.xlu1 %v1984_v58, %s2789_s3 }
0x2983   :  { %v1987_v60 = vpop.permute.xlu1 %1986 }
0x2984   :  { %v1989_v5 = vadd.f32 %v1987_v60, %v1979_v39 }
0x2986   :  { %2707 = vtanh.f32 %v1989_v5 }
0x2990   :  { %v2708_v9 = vpop.eup %2707 }
0x2991   :  { %1992 = vrot.lane.b32.xlu0 %v2708_v9, %s2788_s26 }
0x2a03   :  { %v1993_v11 = vpop.permute.xlu0 %1992 }
0x2a04   :  { %v1995_v13 = vmul.f32 %v2706_v53, %v1993_v11 }
0x2a06   :  { %2008 = vrot.lane.b32.xlu1 %v1995_v13, %s2789_s3 }
0x2a78   :  { %v2009_v14 = vpop.permute.xlu1 %2008 }
0x2a79   :  { %2491 = vmatmul.mubr.msk.f32.vlgmr.msra.gmra.mrb[28].mxu0 %vm215_vm3, %v2009_v14 }
0x2b4c   :  { %v2078_v10 = vpop.f32.mrb[28].mxu0 }
0x2b4d   :  { %v2079_v16 = vadd.f32 %v2164_v15, %v2078_v10  ;;  %v2492_v0 = vpop.f32.mrb[29].mxu0 }
0x2b4f   :  { %2082 = vst [vmem:[#allocation8] sm:$0xff] %v2079_v16 }
0x2b50   :  { %2764 = shalt.err (!%p2761_p6)
}
0x2b51   :  { %s2765_s27 = scalar_lea.hbm %s3216_s9, 128 }
0x2b52   :  { %p2766_p7 = scmp.ne.s32.totalorder %s3216_s9, %s2765_s27  ;;  %p2769_p8 = scmp.lt.u32.totalorder %s2765_s27, %s3216_s9 }
0x2b54   :  { %p2771_p9 = pnand %p2769_p8, %p2766_p7 }
0x2b56   :  { %2774 = shalt.err (!%p2771_p9)
}
0x2b57   :  { %2092 = dma.vmem_to_hbm [thread:$0]  %s2090_s2, 128, %s3216_s9, [#allocation5]  }
0x2b58   :  { %2779 = dma.done.wait [#allocation5], 128  }
0x2b59   :  { %2780 = vsyncadd [#allocation5], 4294967168 }
0x2b5a   :  { %2096 = vsyncpa [#allocation4], 1 }
0x2b5b   :  { %2097 = vsyncpa [#allocation7], 1 }
0x2b5c   :  { %2098 = vsyncpa [#allocation5], 1 }

</bundles_post_ra>
